<compile_context>
chip_gen: v5e
topology: v5e:2x2
jax: 0.10.0
libtpu: 0.0.40
codegen_flags: <defaults>
</compile_context>

<pallas_src>
import jax
import jax.numpy as jnp
import numpy as np
from jax.experimental import pallas as pl
from jax.experimental.pallas import tpu as pltpu


def _lcn_lstm_kernel(x_ref, M1_ref, b1_ref, M2_ref, b2_ref,
                     Wih_ref, Whh_ref, bl_ref, Wfc_ref, bfc_ref, out_ref):
    T, B, _ = x_ref.shape
    H = Whh_ref.shape[0]

    # Hoist loop-invariant weight/bias loads out of the unrolled time loop.
    M1 = M1_ref[...]      # (N*D, N*D), BN scale folded into columns
    b1 = b1_ref[...]      # (1, N*D)
    M2 = M2_ref[...]      # (N*D, N*D)
    b2 = b2_ref[...]      # (1, N*D)
    Wih = Wih_ref[...]    # (N*D, 4H), feature mean-pool folded in
    Whh = Whh_ref[...]    # (H, 4H)
    bl = bl_ref[...]      # (1, 4H)

    def step(t, carry):
        h, c = carry
        x = x_ref[t]                                                  # (B, N*D)
        # lcn1: relu(BN(A @ x @ W1 + b1))  == relu(x_flat @ M1 + b1_eff)
        h1 = jnp.maximum(
            jnp.dot(x, M1, preferred_element_type=jnp.float32) + b1, 0.0)
        # lcn2: relu(A @ h1 @ W2 + b2)     == relu(h1_flat @ M2 + b2_flat)
        h2 = jnp.maximum(
            jnp.dot(h1, M2, preferred_element_type=jnp.float32) + b2, 0.0)
        # mean-pool over D + LSTM input projection, fused into one matmul
        gates = (jnp.dot(h2, Wih, preferred_element_type=jnp.float32)
                 + jnp.dot(h, Whh, preferred_element_type=jnp.float32)
                 + bl)                                                # (B, 4H)
        i_g = jax.nn.sigmoid(gates[:, 0 * H:1 * H])
        f_g = jax.nn.sigmoid(gates[:, 1 * H:2 * H])
        g_g = jnp.tanh(gates[:, 2 * H:3 * H])
        o_g = jax.nn.sigmoid(gates[:, 3 * H:4 * H])
        c_new = f_g * c + i_g * g_g
        h_new = o_g * jnp.tanh(c_new)
        return h_new, c_new

    h0 = jnp.zeros((B, H), jnp.float32)
    c0 = jnp.zeros((B, H), jnp.float32)
    h, _ = jax.lax.fori_loop(0, T, step, (h0, c0), unroll=True)

    out_ref[...] = (jnp.dot(h, Wfc_ref[...], preferred_element_type=jnp.float32)
                    + bfc_ref[...])


def lcn_p_lstm_forward(data, A, params):
    """data: (B, T, N, D) float, A: (N, N). Returns (B, num_class) float32."""
    B, T, N, D = data.shape
    C = params["Wfc"].shape[1]
    eps = 1e-5
    f32 = jnp.float32
    A = A.astype(f32)

    # Fold BatchNorm1d (eval mode) into an affine y = x * scale + shift.
    bn_scale = params["gamma"].astype(f32) / jnp.sqrt(
        params["running_var"].astype(f32) + eps)                         # (1, D)
    bn_shift = params["beta"].astype(f32) - params["running_mean"].astype(f32) * bn_scale

    # Flatten (N, D) -> N*D (row-major) and build fused per-layer matrices:
    # (A @ x_b) @ W == x_flat @ kron(A.T, W) on the flattened layout.
    def tile_feat(v):                 # (1, D) -> (1, N*D); index n*D+d -> v[d]
        return jnp.tile(v.astype(f32), (1, N))

    M1 = jnp.kron(A.T, params["W1"].astype(f32)) * tile_feat(bn_scale)   # (ND, ND)
    bias1 = tile_feat(params["b1"].astype(f32) * bn_scale + bn_shift)    # (1, ND)
    M2 = jnp.kron(A.T, params["W2"].astype(f32))                         # (ND, ND)
    bias2 = tile_feat(params["b2"])                                      # (1, ND)

    # Mean-pool over D folded into the LSTM input projection.
    Wih_pool = jnp.repeat(params["Wih"].astype(f32), D, axis=0) / D      # (ND, 4H)

    # (B, T, N, D) -> (T, B, N*D): time leading so the kernel indexes x_ref[t].
    x_seq = data.astype(f32).reshape(B, T, N * D).transpose(1, 0, 2)

    n_in = 10
    return pl.pallas_call(
        _lcn_lstm_kernel,
        out_shape=jax.ShapeDtypeStruct((B, C), jnp.float32),
        in_specs=[pl.BlockSpec(memory_space=pltpu.MemorySpace.VMEM)] * n_in,
        out_specs=pl.BlockSpec(memory_space=pltpu.MemorySpace.VMEM),
    )(x_seq, M1, bias1, M2, bias2, Wih_pool,
      params["Whh"].astype(f32), params["b_lstm"].astype(f32),
      params["Wfc"].astype(f32), params["bfc"].astype(f32))


def reference_forward(data, A, p):
    """Pure-JAX reference mirroring the original per-timestep module math."""
    B, T, N, D = data.shape
    H = p["Whh"].shape[0]
    eps = 1e-5
    h = jnp.zeros((B, H), jnp.float32)
    c = jnp.zeros((B, H), jnp.float32)
    bn_scale = p["gamma"] / jnp.sqrt(p["running_var"] + eps)
    bn_shift = p["beta"] - p["running_mean"] * bn_scale
    for t in range(T):
        x = data[:, t]                                       # (B, N, D)
        h1 = jnp.einsum("nm,bmd->bnd", A, x)
        h1 = h1 @ p["W1"] + p["b1"]
        h1 = h1 * bn_scale + bn_shift
        h1 = jnp.maximum(h1, 0.0)
        h2 = jnp.einsum("nm,bmd->bnd", A, h1)
        h2 = h2 @ p["W2"] + p["b2"]
        h2 = jnp.maximum(h2, 0.0)
        xt = jnp.mean(h2, axis=-1)                           # (B, N)
        gates = xt @ p["Wih"] + h @ p["Whh"] + p["b_lstm"]
        i_g = jax.nn.sigmoid(gates[:, :H])
        f_g = jax.nn.sigmoid(gates[:, H:2 * H])
        g_g = jnp.tanh(gates[:, 2 * H:3 * H])
        o_g = jax.nn.sigmoid(gates[:, 3 * H:])
        c = f_g * c + i_g * g_g
        h = o_g * jnp.tanh(c)
    return h @ p["Wfc"] + p["bfc"]


if __name__ == "__main__":
    # batch=2, time=8, num_nodes=16, in_dim=out_dim=4, hidden_dim=32, num_class=8
    B, T, N, D, H, C = 2, 8, 16, 4, 32, 8

    key = jax.random.PRNGKey(0)
    keys = jax.random.split(key, 15)
    s = 0.1
    params = {
        "W1": jax.random.normal(keys[0], (D, D), jnp.float32) * s,
        "b1": jax.random.normal(keys[1], (1, D), jnp.float32) * s,
        "gamma": 1.0 + jax.random.normal(keys[2], (1, D), jnp.float32) * s,
        "beta": jax.random.normal(keys[3], (1, D), jnp.float32) * s,
        "running_mean": jax.random.normal(keys[4], (1, D), jnp.float32) * s,
        "running_var": 1.0 + jax.random.uniform(keys[5], (1, D), jnp.float32) * 0.5,
        "W2": jax.random.normal(keys[6], (D, D), jnp.float32) * s,
        "b2": jax.random.normal(keys[7], (1, D), jnp.float32) * s,
        "Wih": jax.random.normal(keys[8], (N, 4 * H), jnp.float32) * s,
        "Whh": jax.random.normal(keys[9], (H, 4 * H), jnp.float32) * s,
        "b_lstm": jax.random.normal(keys[10], (1, 4 * H), jnp.float32) * s,
        "Wfc": jax.random.normal(keys[11], (H, C), jnp.float32) * s,
        "bfc": jax.random.normal(keys[12], (1, C), jnp.float32) * s,
    }

    data = jax.random.normal(keys[13], (B, T, N, D), jnp.float32)
    A = jax.random.uniform(keys[14], (N, N), jnp.float32)
    A = A / jnp.sum(A, axis=1, keepdims=True)   # row-normalized adjacency-like

    out = jax.block_until_ready(lcn_p_lstm_forward(data, A, params))
    ref = reference_forward(data, A, params)
    np.testing.assert_allclose(np.asarray(out), np.asarray(ref),
                               rtol=1e-3, atol=1e-3)
    print("KERNEL_OK")
</pallas_src>

<mosaic_0001>
module attributes {stable_mosaic.version = 11 : i64} {
  func.func @_lcn_lstm_kernel(%arg0: memref<8x2x64xf32, #tpu.memory_space<vmem>>, %arg1: memref<64x64xf32, #tpu.memory_space<vmem>>, %arg2: memref<1x64xf32, #tpu.memory_space<vmem>>, %arg3: memref<64x64xf32, #tpu.memory_space<vmem>>, %arg4: memref<1x64xf32, #tpu.memory_space<vmem>>, %arg5: memref<64x128xf32, #tpu.memory_space<vmem>>, %arg6: memref<32x128xf32, #tpu.memory_space<vmem>>, %arg7: memref<1x128xf32, #tpu.memory_space<vmem>>, %arg8: memref<32x8xf32, #tpu.memory_space<vmem>>, %arg9: memref<1x8xf32, #tpu.memory_space<vmem>>, %arg10: memref<2x8xf32, #tpu.memory_space<vmem>>) attributes {dimension_semantics = [], scalar_prefetch = 0 : i64, scratch_operands = 0 : i64, tpu.core_type = #tpu.core_type<tc>} {
    %c0 = arith.constant 0 : index
    %c0_0 = arith.constant 0 : index
    %0 = vector.load %arg1[%c0, %c0_0] : memref<64x64xf32, #tpu.memory_space<vmem>>, vector<64x64xf32>
    %c0_1 = arith.constant 0 : index
    %c0_2 = arith.constant 0 : index
    %1 = vector.load %arg2[%c0_1, %c0_2] : memref<1x64xf32, #tpu.memory_space<vmem>>, vector<1x64xf32>
    %c0_3 = arith.constant 0 : index
    %c0_4 = arith.constant 0 : index
    %2 = vector.load %arg3[%c0_3, %c0_4] : memref<64x64xf32, #tpu.memory_space<vmem>>, vector<64x64xf32>
    %c0_5 = arith.constant 0 : index
    %c0_6 = arith.constant 0 : index
    %3 = vector.load %arg4[%c0_5, %c0_6] : memref<1x64xf32, #tpu.memory_space<vmem>>, vector<1x64xf32>
    %c0_7 = arith.constant 0 : index
    %c0_8 = arith.constant 0 : index
    %4 = vector.load %arg5[%c0_7, %c0_8] : memref<64x128xf32, #tpu.memory_space<vmem>>, vector<64x128xf32>
    %c0_9 = arith.constant 0 : index
    %c0_10 = arith.constant 0 : index
    %5 = vector.load %arg6[%c0_9, %c0_10] : memref<32x128xf32, #tpu.memory_space<vmem>>, vector<32x128xf32>
    %c0_11 = arith.constant 0 : index
    %c0_12 = arith.constant 0 : index
    %6 = vector.load %arg7[%c0_11, %c0_12] : memref<1x128xf32, #tpu.memory_space<vmem>>, vector<1x128xf32>
    %cst = arith.constant 0.000000e+00 : f32
    %7 = vector.broadcast %cst : f32 to vector<2x32xf32>
    %cst_13 = arith.constant 0.000000e+00 : f32
    %8 = vector.broadcast %cst_13 : f32 to vector<2x32xf32>
    %c0_i32 = arith.constant 0 : i32
    %9 = arith.index_cast %c0_i32 : i32 to index
    %c0_14 = arith.constant 0 : index
    %c0_15 = arith.constant 0 : index
    %10 = vector.load %arg0[%9, %c0_14, %c0_15] : memref<8x2x64xf32, #tpu.memory_space<vmem>>, vector<1x2x64xf32>
    %11 = vector.shape_cast %10 : vector<1x2x64xf32> to vector<2x64xf32>
    %cst_16 = arith.constant dense<0.000000e+00> : vector<2x64xf32>
    %12 = tpu.matmul %11, %0, %cst_16 {dimension_numbers = #tpu.dot_dimension_numbers<[1], [0], [0], [1], [0, 0, 1, 1], [], []>} : vector<2x64xf32>, vector<64x64xf32>, vector<2x64xf32> -> vector<2x64xf32>
    %13 = vector.broadcast %1 : vector<1x64xf32> to vector<2x64xf32>
    %14 = arith.addf %12, %13 : vector<2x64xf32>
    %cst_17 = arith.constant 0.000000e+00 : f32
    %15 = vector.broadcast %cst_17 : f32 to vector<2x64xf32>
    %16 = arith.maximumf %14, %15 : vector<2x64xf32>
    %cst_18 = arith.constant dense<0.000000e+00> : vector<2x64xf32>
    %17 = tpu.matmul %16, %2, %cst_18 {dimension_numbers = #tpu.dot_dimension_numbers<[1], [0], [0], [1], [0, 0, 1, 1], [], []>} : vector<2x64xf32>, vector<64x64xf32>, vector<2x64xf32> -> vector<2x64xf32>
    %18 = vector.broadcast %3 : vector<1x64xf32> to vector<2x64xf32>
    %19 = arith.addf %17, %18 : vector<2x64xf32>
    %cst_19 = arith.constant 0.000000e+00 : f32
    %20 = vector.broadcast %cst_19 : f32 to vector<2x64xf32>
    %21 = arith.maximumf %19, %20 : vector<2x64xf32>
    %cst_20 = arith.constant dense<0.000000e+00> : vector<2x128xf32>
    %22 = tpu.matmul %21, %4, %cst_20 {dimension_numbers = #tpu.dot_dimension_numbers<[1], [0], [0], [1], [0, 0, 1, 1], [], []>} : vector<2x64xf32>, vector<64x128xf32>, vector<2x128xf32> -> vector<2x128xf32>
    %cst_21 = arith.constant dense<0.000000e+00> : vector<2x128xf32>
    %23 = tpu.matmul %7, %5, %cst_21 {dimension_numbers = #tpu.dot_dimension_numbers<[1], [0], [0], [1], [0, 0, 1, 1], [], []>} : vector<2x32xf32>, vector<32x128xf32>, vector<2x128xf32> -> vector<2x128xf32>
    %24 = arith.addf %22, %23 : vector<2x128xf32>
    %25 = vector.broadcast %6 : vector<1x128xf32> to vector<2x128xf32>
    %26 = arith.addf %24, %25 : vector<2x128xf32>
    %27 = vector.extract_strided_slice %26 {offsets = [0, 0], sizes = [2, 32], strides = [1, 1]} : vector<2x128xf32> to vector<2x32xf32>
    %28 = arith.negf %27 : vector<2x32xf32>
    %29 = math.exp %28 : vector<2x32xf32>
    %cst_22 = arith.constant 1.000000e+00 : f32
    %30 = vector.broadcast %cst_22 : f32 to vector<2x32xf32>
    %31 = arith.addf %30, %29 : vector<2x32xf32>
    %32 = arith.divf %30, %31 : vector<2x32xf32>
    %33 = vector.extract_strided_slice %26 {offsets = [0, 32], sizes = [2, 32], strides = [1, 1]} : vector<2x128xf32> to vector<2x32xf32>
    %34 = arith.negf %33 : vector<2x32xf32>
    %35 = math.exp %34 : vector<2x32xf32>
    %cst_23 = arith.constant 1.000000e+00 : f32
    %36 = vector.broadcast %cst_23 : f32 to vector<2x32xf32>
    %37 = arith.addf %36, %35 : vector<2x32xf32>
    %38 = arith.divf %36, %37 : vector<2x32xf32>
    %39 = vector.extract_strided_slice %26 {offsets = [0, 64], sizes = [2, 32], strides = [1, 1]} : vector<2x128xf32> to vector<2x32xf32>
    %40 = math.tanh %39 : vector<2x32xf32>
    %41 = vector.extract_strided_slice %26 {offsets = [0, 96], sizes = [2, 32], strides = [1, 1]} : vector<2x128xf32> to vector<2x32xf32>
    %42 = arith.negf %41 : vector<2x32xf32>
    %43 = math.exp %42 : vector<2x32xf32>
    %cst_24 = arith.constant 1.000000e+00 : f32
    %44 = vector.broadcast %cst_24 : f32 to vector<2x32xf32>
    %45 = arith.addf %44, %43 : vector<2x32xf32>
    %46 = arith.divf %44, %45 : vector<2x32xf32>
    %47 = arith.mulf %38, %8 : vector<2x32xf32>
    %48 = arith.mulf %32, %40 : vector<2x32xf32>
    %49 = arith.addf %47, %48 : vector<2x32xf32>
    %50 = math.tanh %49 : vector<2x32xf32>
    %51 = arith.mulf %46, %50 : vector<2x32xf32>
    %c1_i32 = arith.constant 1 : i32
    %52 = arith.index_cast %c1_i32 : i32 to index
    %c0_25 = arith.constant 0 : index
    %c0_26 = arith.constant 0 : index
    %53 = vector.load %arg0[%52, %c0_25, %c0_26] : memref<8x2x64xf32, #tpu.memory_space<vmem>>, vector<1x2x64xf32>
    %54 = vector.shape_cast %53 : vector<1x2x64xf32> to vector<2x64xf32>
    %cst_27 = arith.constant dense<0.000000e+00> : vector<2x64xf32>
    %55 = tpu.matmul %54, %0, %cst_27 {dimension_numbers = #tpu.dot_dimension_numbers<[1], [0], [0], [1], [0, 0, 1, 1], [], []>} : vector<2x64xf32>, vector<64x64xf32>, vector<2x64xf32> -> vector<2x64xf32>
    %56 = vector.broadcast %1 : vector<1x64xf32> to vector<2x64xf32>
    %57 = arith.addf %55, %56 : vector<2x64xf32>
    %cst_28 = arith.constant 0.000000e+00 : f32
    %58 = vector.broadcast %cst_28 : f32 to vector<2x64xf32>
    %59 = arith.maximumf %57, %58 : vector<2x64xf32>
    %cst_29 = arith.constant dense<0.000000e+00> : vector<2x64xf32>
    %60 = tpu.matmul %59, %2, %cst_29 {dimension_numbers = #tpu.dot_dimension_numbers<[1], [0], [0], [1], [0, 0, 1, 1], [], []>} : vector<2x64xf32>, vector<64x64xf32>, vector<2x64xf32> -> vector<2x64xf32>
    %61 = vector.broadcast %3 : vector<1x64xf32> to vector<2x64xf32>
    %62 = arith.addf %60, %61 : vector<2x64xf32>
    %cst_30 = arith.constant 0.000000e+00 : f32
    %63 = vector.broadcast %cst_30 : f32 to vector<2x64xf32>
    %64 = arith.maximumf %62, %63 : vector<2x64xf32>
    %cst_31 = arith.constant dense<0.000000e+00> : vector<2x128xf32>
    %65 = tpu.matmul %64, %4, %cst_31 {dimension_numbers = #tpu.dot_dimension_numbers<[1], [0], [0], [1], [0, 0, 1, 1], [], []>} : vector<2x64xf32>, vector<64x128xf32>, vector<2x128xf32> -> vector<2x128xf32>
    %cst_32 = arith.constant dense<0.000000e+00> : vector<2x128xf32>
    %66 = tpu.matmul %51, %5, %cst_32 {dimension_numbers = #tpu.dot_dimension_numbers<[1], [0], [0], [1], [0, 0, 1, 1], [], []>} : vector<2x32xf32>, vector<32x128xf32>, vector<2x128xf32> -> vector<2x128xf32>
    %67 = arith.addf %65, %66 : vector<2x128xf32>
    %68 = vector.broadcast %6 : vector<1x128xf32> to vector<2x128xf32>
    %69 = arith.addf %67, %68 : vector<2x128xf32>
    %70 = vector.extract_strided_slice %69 {offsets = [0, 0], sizes = [2, 32], strides = [1, 1]} : vector<2x128xf32> to vector<2x32xf32>
    %71 = arith.negf %70 : vector<2x32xf32>
    %72 = math.exp %71 : vector<2x32xf32>
    %cst_33 = arith.constant 1.000000e+00 : f32
    %73 = vector.broadcast %cst_33 : f32 to vector<2x32xf32>
    %74 = arith.addf %73, %72 : vector<2x32xf32>
    %75 = arith.divf %73, %74 : vector<2x32xf32>
    %76 = vector.extract_strided_slice %69 {offsets = [0, 32], sizes = [2, 32], strides = [1, 1]} : vector<2x128xf32> to vector<2x32xf32>
    %77 = arith.negf %76 : vector<2x32xf32>
    %78 = math.exp %77 : vector<2x32xf32>
    %cst_34 = arith.constant 1.000000e+00 : f32
    %79 = vector.broadcast %cst_34 : f32 to vector<2x32xf32>
    %80 = arith.addf %79, %78 : vector<2x32xf32>
    %81 = arith.divf %79, %80 : vector<2x32xf32>
    %82 = vector.extract_strided_slice %69 {offsets = [0, 64], sizes = [2, 32], strides = [1, 1]} : vector<2x128xf32> to vector<2x32xf32>
    %83 = math.tanh %82 : vector<2x32xf32>
    %84 = vector.extract_strided_slice %69 {offsets = [0, 96], sizes = [2, 32], strides = [1, 1]} : vector<2x128xf32> to vector<2x32xf32>
    %85 = arith.negf %84 : vector<2x32xf32>
    %86 = math.exp %85 : vector<2x32xf32>
    %cst_35 = arith.constant 1.000000e+00 : f32
    %87 = vector.broadcast %cst_35 : f32 to vector<2x32xf32>
    %88 = arith.addf %87, %86 : vector<2x32xf32>
    %89 = arith.divf %87, %88 : vector<2x32xf32>
    %90 = arith.mulf %81, %49 : vector<2x32xf32>
    %91 = arith.mulf %75, %83 : vector<2x32xf32>
    %92 = arith.addf %90, %91 : vector<2x32xf32>
    %93 = math.tanh %92 : vector<2x32xf32>
    %94 = arith.mulf %89, %93 : vector<2x32xf32>
    %c2_i32 = arith.constant 2 : i32
    %95 = arith.index_cast %c2_i32 : i32 to index
    %c0_36 = arith.constant 0 : index
    %c0_37 = arith.constant 0 : index
    %96 = vector.load %arg0[%95, %c0_36, %c0_37] : memref<8x2x64xf32, #tpu.memory_space<vmem>>, vector<1x2x64xf32>
    %97 = vector.shape_cast %96 : vector<1x2x64xf32> to vector<2x64xf32>
    %cst_38 = arith.constant dense<0.000000e+00> : vector<2x64xf32>
    %98 = tpu.matmul %97, %0, %cst_38 {dimension_numbers = #tpu.dot_dimension_numbers<[1], [0], [0], [1], [0, 0, 1, 1], [], []>} : vector<2x64xf32>, vector<64x64xf32>, vector<2x64xf32> -> vector<2x64xf32>
    %99 = vector.broadcast %1 : vector<1x64xf32> to vector<2x64xf32>
    %100 = arith.addf %98, %99 : vector<2x64xf32>
    %cst_39 = arith.constant 0.000000e+00 : f32
    %101 = vector.broadcast %cst_39 : f32 to vector<2x64xf32>
    %102 = arith.maximumf %100, %101 : vector<2x64xf32>
    %cst_40 = arith.constant dense<0.000000e+00> : vector<2x64xf32>
    %103 = tpu.matmul %102, %2, %cst_40 {dimension_numbers = #tpu.dot_dimension_numbers<[1], [0], [0], [1], [0, 0, 1, 1], [], []>} : vector<2x64xf32>, vector<64x64xf32>, vector<2x64xf32> -> vector<2x64xf32>
    %104 = vector.broadcast %3 : vector<1x64xf32> to vector<2x64xf32>
    %105 = arith.addf %103, %104 : vector<2x64xf32>
    %cst_41 = arith.constant 0.000000e+00 : f32
    %106 = vector.broadcast %cst_41 : f32 to vector<2x64xf32>
    %107 = arith.maximumf %105, %106 : vector<2x64xf32>
    %cst_42 = arith.constant dense<0.000000e+00> : vector<2x128xf32>
    %108 = tpu.matmul %107, %4, %cst_42 {dimension_numbers = #tpu.dot_dimension_numbers<[1], [0], [0], [1], [0, 0, 1, 1], [], []>} : vector<2x64xf32>, vector<64x128xf32>, vector<2x128xf32> -> vector<2x128xf32>
    %cst_43 = arith.constant dense<0.000000e+00> : vector<2x128xf32>
    %109 = tpu.matmul %94, %5, %cst_43 {dimension_numbers = #tpu.dot_dimension_numbers<[1], [0], [0], [1], [0, 0, 1, 1], [], []>} : vector<2x32xf32>, vector<32x128xf32>, vector<2x128xf32> -> vector<2x128xf32>
    %110 = arith.addf %108, %109 : vector<2x128xf32>
    %111 = vector.broadcast %6 : vector<1x128xf32> to vector<2x128xf32>
    %112 = arith.addf %110, %111 : vector<2x128xf32>
    %113 = vector.extract_strided_slice %112 {offsets = [0, 0], sizes = [2, 32], strides = [1, 1]} : vector<2x128xf32> to vector<2x32xf32>
    %114 = arith.negf %113 : vector<2x32xf32>
    %115 = math.exp %114 : vector<2x32xf32>
    %cst_44 = arith.constant 1.000000e+00 : f32
    %116 = vector.broadcast %cst_44 : f32 to vector<2x32xf32>
    %117 = arith.addf %116, %115 : vector<2x32xf32>
    %118 = arith.divf %116, %117 : vector<2x32xf32>
    %119 = vector.extract_strided_slice %112 {offsets = [0, 32], sizes = [2, 32], strides = [1, 1]} : vector<2x128xf32> to vector<2x32xf32>
    %120 = arith.negf %119 : vector<2x32xf32>
    %121 = math.exp %120 : vector<2x32xf32>
    %cst_45 = arith.constant 1.000000e+00 : f32
    %122 = vector.broadcast %cst_45 : f32 to vector<2x32xf32>
    %123 = arith.addf %122, %121 : vector<2x32xf32>
    %124 = arith.divf %122, %123 : vector<2x32xf32>
    %125 = vector.extract_strided_slice %112 {offsets = [0, 64], sizes = [2, 32], strides = [1, 1]} : vector<2x128xf32> to vector<2x32xf32>
    %126 = math.tanh %125 : vector<2x32xf32>
    %127 = vector.extract_strided_slice %112 {offsets = [0, 96], sizes = [2, 32], strides = [1, 1]} : vector<2x128xf32> to vector<2x32xf32>
    %128 = arith.negf %127 : vector<2x32xf32>
    %129 = math.exp %128 : vector<2x32xf32>
    %cst_46 = arith.constant 1.000000e+00 : f32
    %130 = vector.broadcast %cst_46 : f32 to vector<2x32xf32>
    %131 = arith.addf %130, %129 : vector<2x32xf32>
    %132 = arith.divf %130, %131 : vector<2x32xf32>
    %133 = arith.mulf %124, %92 : vector<2x32xf32>
    %134 = arith.mulf %118, %126 : vector<2x32xf32>
    %135 = arith.addf %133, %134 : vector<2x32xf32>
    %136 = math.tanh %135 : vector<2x32xf32>
    %137 = arith.mulf %132, %136 : vector<2x32xf32>
    %c3_i32 = arith.constant 3 : i32
    %138 = arith.index_cast %c3_i32 : i32 to index
    %c0_47 = arith.constant 0 : index
    %c0_48 = arith.constant 0 : index
    %139 = vector.load %arg0[%138, %c0_47, %c0_48] : memref<8x2x64xf32, #tpu.memory_space<vmem>>, vector<1x2x64xf32>
    %140 = vector.shape_cast %139 : vector<1x2x64xf32> to vector<2x64xf32>
    %cst_49 = arith.constant dense<0.000000e+00> : vector<2x64xf32>
    %141 = tpu.matmul %140, %0, %cst_49 {dimension_numbers = #tpu.dot_dimension_numbers<[1], [0], [0], [1], [0, 0, 1, 1], [], []>} : vector<2x64xf32>, vector<64x64xf32>, vector<2x64xf32> -> vector<2x64xf32>
    %142 = vector.broadcast %1 : vector<1x64xf32> to vector<2x64xf32>
    %143 = arith.addf %141, %142 : vector<2x64xf32>
    %cst_50 = arith.constant 0.000000e+00 : f32
    %144 = vector.broadcast %cst_50 : f32 to vector<2x64xf32>
    %145 = arith.maximumf %143, %144 : vector<2x64xf32>
    %cst_51 = arith.constant dense<0.000000e+00> : vector<2x64xf32>
    %146 = tpu.matmul %145, %2, %cst_51 {dimension_numbers = #tpu.dot_dimension_numbers<[1], [0], [0], [1], [0, 0, 1, 1], [], []>} : vector<2x64xf32>, vector<64x64xf32>, vector<2x64xf32> -> vector<2x64xf32>
    %147 = vector.broadcast %3 : vector<1x64xf32> to vector<2x64xf32>
    %148 = arith.addf %146, %147 : vector<2x64xf32>
    %cst_52 = arith.constant 0.000000e+00 : f32
    %149 = vector.broadcast %cst_52 : f32 to vector<2x64xf32>
    %150 = arith.maximumf %148, %149 : vector<2x64xf32>
    %cst_53 = arith.constant dense<0.000000e+00> : vector<2x128xf32>
    %151 = tpu.matmul %150, %4, %cst_53 {dimension_numbers = #tpu.dot_dimension_numbers<[1], [0], [0], [1], [0, 0, 1, 1], [], []>} : vector<2x64xf32>, vector<64x128xf32>, vector<2x128xf32> -> vector<2x128xf32>
    %cst_54 = arith.constant dense<0.000000e+00> : vector<2x128xf32>
    %152 = tpu.matmul %137, %5, %cst_54 {dimension_numbers = #tpu.dot_dimension_numbers<[1], [0], [0], [1], [0, 0, 1, 1], [], []>} : vector<2x32xf32>, vector<32x128xf32>, vector<2x128xf32> -> vector<2x128xf32>
    %153 = arith.addf %151, %152 : vector<2x128xf32>
    %154 = vector.broadcast %6 : vector<1x128xf32> to vector<2x128xf32>
    %155 = arith.addf %153, %154 : vector<2x128xf32>
    %156 = vector.extract_strided_slice %155 {offsets = [0, 0], sizes = [2, 32], strides = [1, 1]} : vector<2x128xf32> to vector<2x32xf32>
    %157 = arith.negf %156 : vector<2x32xf32>
    %158 = math.exp %157 : vector<2x32xf32>
    %cst_55 = arith.constant 1.000000e+00 : f32
    %159 = vector.broadcast %cst_55 : f32 to vector<2x32xf32>
    %160 = arith.addf %159, %158 : vector<2x32xf32>
    %161 = arith.divf %159, %160 : vector<2x32xf32>
    %162 = vector.extract_strided_slice %155 {offsets = [0, 32], sizes = [2, 32], strides = [1, 1]} : vector<2x128xf32> to vector<2x32xf32>
    %163 = arith.negf %162 : vector<2x32xf32>
    %164 = math.exp %163 : vector<2x32xf32>
    %cst_56 = arith.constant 1.000000e+00 : f32
    %165 = vector.broadcast %cst_56 : f32 to vector<2x32xf32>
    %166 = arith.addf %165, %164 : vector<2x32xf32>
    %167 = arith.divf %165, %166 : vector<2x32xf32>
    %168 = vector.extract_strided_slice %155 {offsets = [0, 64], sizes = [2, 32], strides = [1, 1]} : vector<2x128xf32> to vector<2x32xf32>
    %169 = math.tanh %168 : vector<2x32xf32>
    %170 = vector.extract_strided_slice %155 {offsets = [0, 96], sizes = [2, 32], strides = [1, 1]} : vector<2x128xf32> to vector<2x32xf32>
    %171 = arith.negf %170 : vector<2x32xf32>
    %172 = math.exp %171 : vector<2x32xf32>
    %cst_57 = arith.constant 1.000000e+00 : f32
    %173 = vector.broadcast %cst_57 : f32 to vector<2x32xf32>
    %174 = arith.addf %173, %172 : vector<2x32xf32>
    %175 = arith.divf %173, %174 : vector<2x32xf32>
    %176 = arith.mulf %167, %135 : vector<2x32xf32>
    %177 = arith.mulf %161, %169 : vector<2x32xf32>
    %178 = arith.addf %176, %177 : vector<2x32xf32>
    %179 = math.tanh %178 : vector<2x32xf32>
    %180 = arith.mulf %175, %179 : vector<2x32xf32>
    %c4_i32 = arith.constant 4 : i32
    %181 = arith.index_cast %c4_i32 : i32 to index
    %c0_58 = arith.constant 0 : index
    %c0_59 = arith.constant 0 : index
    %182 = vector.load %arg0[%181, %c0_58, %c0_59] : memref<8x2x64xf32, #tpu.memory_space<vmem>>, vector<1x2x64xf32>
    %183 = vector.shape_cast %182 : vector<1x2x64xf32> to vector<2x64xf32>
    %cst_60 = arith.constant dense<0.000000e+00> : vector<2x64xf32>
    %184 = tpu.matmul %183, %0, %cst_60 {dimension_numbers = #tpu.dot_dimension_numbers<[1], [0], [0], [1], [0, 0, 1, 1], [], []>} : vector<2x64xf32>, vector<64x64xf32>, vector<2x64xf32> -> vector<2x64xf32>
    %185 = vector.broadcast %1 : vector<1x64xf32> to vector<2x64xf32>
    %186 = arith.addf %184, %185 : vector<2x64xf32>
    %cst_61 = arith.constant 0.000000e+00 : f32
    %187 = vector.broadcast %cst_61 : f32 to vector<2x64xf32>
    %188 = arith.maximumf %186, %187 : vector<2x64xf32>
    %cst_62 = arith.constant dense<0.000000e+00> : vector<2x64xf32>
    %189 = tpu.matmul %188, %2, %cst_62 {dimension_numbers = #tpu.dot_dimension_numbers<[1], [0], [0], [1], [0, 0, 1, 1], [], []>} : vector<2x64xf32>, vector<64x64xf32>, vector<2x64xf32> -> vector<2x64xf32>
    %190 = vector.broadcast %3 : vector<1x64xf32> to vector<2x64xf32>
    %191 = arith.addf %189, %190 : vector<2x64xf32>
    %cst_63 = arith.constant 0.000000e+00 : f32
    %192 = vector.broadcast %cst_63 : f32 to vector<2x64xf32>
    %193 = arith.maximumf %191, %192 : vector<2x64xf32>
    %cst_64 = arith.constant dense<0.000000e+00> : vector<2x128xf32>
    %194 = tpu.matmul %193, %4, %cst_64 {dimension_numbers = #tpu.dot_dimension_numbers<[1], [0], [0], [1], [0, 0, 1, 1], [], []>} : vector<2x64xf32>, vector<64x128xf32>, vector<2x128xf32> -> vector<2x128xf32>
    %cst_65 = arith.constant dense<0.000000e+00> : vector<2x128xf32>
    %195 = tpu.matmul %180, %5, %cst_65 {dimension_numbers = #tpu.dot_dimension_numbers<[1], [0], [0], [1], [0, 0, 1, 1], [], []>} : vector<2x32xf32>, vector<32x128xf32>, vector<2x128xf32> -> vector<2x128xf32>
    %196 = arith.addf %194, %195 : vector<2x128xf32>
    %197 = vector.broadcast %6 : vector<1x128xf32> to vector<2x128xf32>
    %198 = arith.addf %196, %197 : vector<2x128xf32>
    %199 = vector.extract_strided_slice %198 {offsets = [0, 0], sizes = [2, 32], strides = [1, 1]} : vector<2x128xf32> to vector<2x32xf32>
    %200 = arith.negf %199 : vector<2x32xf32>
    %201 = math.exp %200 : vector<2x32xf32>
    %cst_66 = arith.constant 1.000000e+00 : f32
    %202 = vector.broadcast %cst_66 : f32 to vector<2x32xf32>
    %203 = arith.addf %202, %201 : vector<2x32xf32>
    %204 = arith.divf %202, %203 : vector<2x32xf32>
    %205 = vector.extract_strided_slice %198 {offsets = [0, 32], sizes = [2, 32], strides = [1, 1]} : vector<2x128xf32> to vector<2x32xf32>
    %206 = arith.negf %205 : vector<2x32xf32>
    %207 = math.exp %206 : vector<2x32xf32>
    %cst_67 = arith.constant 1.000000e+00 : f32
    %208 = vector.broadcast %cst_67 : f32 to vector<2x32xf32>
    %209 = arith.addf %208, %207 : vector<2x32xf32>
    %210 = arith.divf %208, %209 : vector<2x32xf32>
    %211 = vector.extract_strided_slice %198 {offsets = [0, 64], sizes = [2, 32], strides = [1, 1]} : vector<2x128xf32> to vector<2x32xf32>
    %212 = math.tanh %211 : vector<2x32xf32>
    %213 = vector.extract_strided_slice %198 {offsets = [0, 96], sizes = [2, 32], strides = [1, 1]} : vector<2x128xf32> to vector<2x32xf32>
    %214 = arith.negf %213 : vector<2x32xf32>
    %215 = math.exp %214 : vector<2x32xf32>
    %cst_68 = arith.constant 1.000000e+00 : f32
    %216 = vector.broadcast %cst_68 : f32 to vector<2x32xf32>
    %217 = arith.addf %216, %215 : vector<2x32xf32>
    %218 = arith.divf %216, %217 : vector<2x32xf32>
    %219 = arith.mulf %210, %178 : vector<2x32xf32>
    %220 = arith.mulf %204, %212 : vector<2x32xf32>
    %221 = arith.addf %219, %220 : vector<2x32xf32>
    %222 = math.tanh %221 : vector<2x32xf32>
    %223 = arith.mulf %218, %222 : vector<2x32xf32>
    %c5_i32 = arith.constant 5 : i32
    %224 = arith.index_cast %c5_i32 : i32 to index
    %c0_69 = arith.constant 0 : index
    %c0_70 = arith.constant 0 : index
    %225 = vector.load %arg0[%224, %c0_69, %c0_70] : memref<8x2x64xf32, #tpu.memory_space<vmem>>, vector<1x2x64xf32>
    %226 = vector.shape_cast %225 : vector<1x2x64xf32> to vector<2x64xf32>
    %cst_71 = arith.constant dense<0.000000e+00> : vector<2x64xf32>
    %227 = tpu.matmul %226, %0, %cst_71 {dimension_numbers = #tpu.dot_dimension_numbers<[1], [0], [0], [1], [0, 0, 1, 1], [], []>} : vector<2x64xf32>, vector<64x64xf32>, vector<2x64xf32> -> vector<2x64xf32>
    %228 = vector.broadcast %1 : vector<1x64xf32> to vector<2x64xf32>
    %229 = arith.addf %227, %228 : vector<2x64xf32>
    %cst_72 = arith.constant 0.000000e+00 : f32
    %230 = vector.broadcast %cst_72 : f32 to vector<2x64xf32>
    %231 = arith.maximumf %229, %230 : vector<2x64xf32>
    %cst_73 = arith.constant dense<0.000000e+00> : vector<2x64xf32>
    %232 = tpu.matmul %231, %2, %cst_73 {dimension_numbers = #tpu.dot_dimension_numbers<[1], [0], [0], [1], [0, 0, 1, 1], [], []>} : vector<2x64xf32>, vector<64x64xf32>, vector<2x64xf32> -> vector<2x64xf32>
    %233 = vector.broadcast %3 : vector<1x64xf32> to vector<2x64xf32>
    %234 = arith.addf %232, %233 : vector<2x64xf32>
    %cst_74 = arith.constant 0.000000e+00 : f32
    %235 = vector.broadcast %cst_74 : f32 to vector<2x64xf32>
    %236 = arith.maximumf %234, %235 : vector<2x64xf32>
    %cst_75 = arith.constant dense<0.000000e+00> : vector<2x128xf32>
    %237 = tpu.matmul %236, %4, %cst_75 {dimension_numbers = #tpu.dot_dimension_numbers<[1], [0], [0], [1], [0, 0, 1, 1], [], []>} : vector<2x64xf32>, vector<64x128xf32>, vector<2x128xf32> -> vector<2x128xf32>
    %cst_76 = arith.constant dense<0.000000e+00> : vector<2x128xf32>
    %238 = tpu.matmul %223, %5, %cst_76 {dimension_numbers = #tpu.dot_dimension_numbers<[1], [0], [0], [1], [0, 0, 1, 1], [], []>} : vector<2x32xf32>, vector<32x128xf32>, vector<2x128xf32> -> vector<2x128xf32>
    %239 = arith.addf %237, %238 : vector<2x128xf32>
    %240 = vector.broadcast %6 : vector<1x128xf32> to vector<2x128xf32>
    %241 = arith.addf %239, %240 : vector<2x128xf32>
    %242 = vector.extract_strided_slice %241 {offsets = [0, 0], sizes = [2, 32], strides = [1, 1]} : vector<2x128xf32> to vector<2x32xf32>
    %243 = arith.negf %242 : vector<2x32xf32>
    %244 = math.exp %243 : vector<2x32xf32>
    %cst_77 = arith.constant 1.000000e+00 : f32
    %245 = vector.broadcast %cst_77 : f32 to vector<2x32xf32>
    %246 = arith.addf %245, %244 : vector<2x32xf32>
    %247 = arith.divf %245, %246 : vector<2x32xf32>
    %248 = vector.extract_strided_slice %241 {offsets = [0, 32], sizes = [2, 32], strides = [1, 1]} : vector<2x128xf32> to vector<2x32xf32>
    %249 = arith.negf %248 : vector<2x32xf32>
    %250 = math.exp %249 : vector<2x32xf32>
    %cst_78 = arith.constant 1.000000e+00 : f32
    %251 = vector.broadcast %cst_78 : f32 to vector<2x32xf32>
    %252 = arith.addf %251, %250 : vector<2x32xf32>
    %253 = arith.divf %251, %252 : vector<2x32xf32>
    %254 = vector.extract_strided_slice %241 {offsets = [0, 64], sizes = [2, 32], strides = [1, 1]} : vector<2x128xf32> to vector<2x32xf32>
    %255 = math.tanh %254 : vector<2x32xf32>
    %256 = vector.extract_strided_slice %241 {offsets = [0, 96], sizes = [2, 32], strides = [1, 1]} : vector<2x128xf32> to vector<2x32xf32>
    %257 = arith.negf %256 : vector<2x32xf32>
    %258 = math.exp %257 : vector<2x32xf32>
    %cst_79 = arith.constant 1.000000e+00 : f32
    %259 = vector.broadcast %cst_79 : f32 to vector<2x32xf32>
    %260 = arith.addf %259, %258 : vector<2x32xf32>
    %261 = arith.divf %259, %260 : vector<2x32xf32>
    %262 = arith.mulf %253, %221 : vector<2x32xf32>
    %263 = arith.mulf %247, %255 : vector<2x32xf32>
    %264 = arith.addf %262, %263 : vector<2x32xf32>
    %265 = math.tanh %264 : vector<2x32xf32>
    %266 = arith.mulf %261, %265 : vector<2x32xf32>
    %c6_i32 = arith.constant 6 : i32
    %267 = arith.index_cast %c6_i32 : i32 to index
    %c0_80 = arith.constant 0 : index
    %c0_81 = arith.constant 0 : index
    %268 = vector.load %arg0[%267, %c0_80, %c0_81] : memref<8x2x64xf32, #tpu.memory_space<vmem>>, vector<1x2x64xf32>
    %269 = vector.shape_cast %268 : vector<1x2x64xf32> to vector<2x64xf32>
    %cst_82 = arith.constant dense<0.000000e+00> : vector<2x64xf32>
    %270 = tpu.matmul %269, %0, %cst_82 {dimension_numbers = #tpu.dot_dimension_numbers<[1], [0], [0], [1], [0, 0, 1, 1], [], []>} : vector<2x64xf32>, vector<64x64xf32>, vector<2x64xf32> -> vector<2x64xf32>
    %271 = vector.broadcast %1 : vector<1x64xf32> to vector<2x64xf32>
    %272 = arith.addf %270, %271 : vector<2x64xf32>
    %cst_83 = arith.constant 0.000000e+00 : f32
    %273 = vector.broadcast %cst_83 : f32 to vector<2x64xf32>
    %274 = arith.maximumf %272, %273 : vector<2x64xf32>
    %cst_84 = arith.constant dense<0.000000e+00> : vector<2x64xf32>
    %275 = tpu.matmul %274, %2, %cst_84 {dimension_numbers = #tpu.dot_dimension_numbers<[1], [0], [0], [1], [0, 0, 1, 1], [], []>} : vector<2x64xf32>, vector<64x64xf32>, vector<2x64xf32> -> vector<2x64xf32>
    %276 = vector.broadcast %3 : vector<1x64xf32> to vector<2x64xf32>
    %277 = arith.addf %275, %276 : vector<2x64xf32>
    %cst_85 = arith.constant 0.000000e+00 : f32
    %278 = vector.broadcast %cst_85 : f32 to vector<2x64xf32>
    %279 = arith.maximumf %277, %278 : vector<2x64xf32>
    %cst_86 = arith.constant dense<0.000000e+00> : vector<2x128xf32>
    %280 = tpu.matmul %279, %4, %cst_86 {dimension_numbers = #tpu.dot_dimension_numbers<[1], [0], [0], [1], [0, 0, 1, 1], [], []>} : vector<2x64xf32>, vector<64x128xf32>, vector<2x128xf32> -> vector<2x128xf32>
    %cst_87 = arith.constant dense<0.000000e+00> : vector<2x128xf32>
    %281 = tpu.matmul %266, %5, %cst_87 {dimension_numbers = #tpu.dot_dimension_numbers<[1], [0], [0], [1], [0, 0, 1, 1], [], []>} : vector<2x32xf32>, vector<32x128xf32>, vector<2x128xf32> -> vector<2x128xf32>
    %282 = arith.addf %280, %281 : vector<2x128xf32>
    %283 = vector.broadcast %6 : vector<1x128xf32> to vector<2x128xf32>
    %284 = arith.addf %282, %283 : vector<2x128xf32>
    %285 = vector.extract_strided_slice %284 {offsets = [0, 0], sizes = [2, 32], strides = [1, 1]} : vector<2x128xf32> to vector<2x32xf32>
    %286 = arith.negf %285 : vector<2x32xf32>
    %287 = math.exp %286 : vector<2x32xf32>
    %cst_88 = arith.constant 1.000000e+00 : f32
    %288 = vector.broadcast %cst_88 : f32 to vector<2x32xf32>
    %289 = arith.addf %288, %287 : vector<2x32xf32>
    %290 = arith.divf %288, %289 : vector<2x32xf32>
    %291 = vector.extract_strided_slice %284 {offsets = [0, 32], sizes = [2, 32], strides = [1, 1]} : vector<2x128xf32> to vector<2x32xf32>
    %292 = arith.negf %291 : vector<2x32xf32>
    %293 = math.exp %292 : vector<2x32xf32>
    %cst_89 = arith.constant 1.000000e+00 : f32
    %294 = vector.broadcast %cst_89 : f32 to vector<2x32xf32>
    %295 = arith.addf %294, %293 : vector<2x32xf32>
    %296 = arith.divf %294, %295 : vector<2x32xf32>
    %297 = vector.extract_strided_slice %284 {offsets = [0, 64], sizes = [2, 32], strides = [1, 1]} : vector<2x128xf32> to vector<2x32xf32>
    %298 = math.tanh %297 : vector<2x32xf32>
    %299 = vector.extract_strided_slice %284 {offsets = [0, 96], sizes = [2, 32], strides = [1, 1]} : vector<2x128xf32> to vector<2x32xf32>
    %300 = arith.negf %299 : vector<2x32xf32>
    %301 = math.exp %300 : vector<2x32xf32>
    %cst_90 = arith.constant 1.000000e+00 : f32
    %302 = vector.broadcast %cst_90 : f32 to vector<2x32xf32>
    %303 = arith.addf %302, %301 : vector<2x32xf32>
    %304 = arith.divf %302, %303 : vector<2x32xf32>
    %305 = arith.mulf %296, %264 : vector<2x32xf32>
    %306 = arith.mulf %290, %298 : vector<2x32xf32>
    %307 = arith.addf %305, %306 : vector<2x32xf32>
    %308 = math.tanh %307 : vector<2x32xf32>
    %309 = arith.mulf %304, %308 : vector<2x32xf32>
    %c7_i32 = arith.constant 7 : i32
    %310 = arith.index_cast %c7_i32 : i32 to index
    %c0_91 = arith.constant 0 : index
    %c0_92 = arith.constant 0 : index
    %311 = vector.load %arg0[%310, %c0_91, %c0_92] : memref<8x2x64xf32, #tpu.memory_space<vmem>>, vector<1x2x64xf32>
    %312 = vector.shape_cast %311 : vector<1x2x64xf32> to vector<2x64xf32>
    %cst_93 = arith.constant dense<0.000000e+00> : vector<2x64xf32>
    %313 = tpu.matmul %312, %0, %cst_93 {dimension_numbers = #tpu.dot_dimension_numbers<[1], [0], [0], [1], [0, 0, 1, 1], [], []>} : vector<2x64xf32>, vector<64x64xf32>, vector<2x64xf32> -> vector<2x64xf32>
    %314 = vector.broadcast %1 : vector<1x64xf32> to vector<2x64xf32>
    %315 = arith.addf %313, %314 : vector<2x64xf32>
    %cst_94 = arith.constant 0.000000e+00 : f32
    %316 = vector.broadcast %cst_94 : f32 to vector<2x64xf32>
    %317 = arith.maximumf %315, %316 : vector<2x64xf32>
    %cst_95 = arith.constant dense<0.000000e+00> : vector<2x64xf32>
    %318 = tpu.matmul %317, %2, %cst_95 {dimension_numbers = #tpu.dot_dimension_numbers<[1], [0], [0], [1], [0, 0, 1, 1], [], []>} : vector<2x64xf32>, vector<64x64xf32>, vector<2x64xf32> -> vector<2x64xf32>
    %319 = vector.broadcast %3 : vector<1x64xf32> to vector<2x64xf32>
    %320 = arith.addf %318, %319 : vector<2x64xf32>
    %cst_96 = arith.constant 0.000000e+00 : f32
    %321 = vector.broadcast %cst_96 : f32 to vector<2x64xf32>
    %322 = arith.maximumf %320, %321 : vector<2x64xf32>
    %cst_97 = arith.constant dense<0.000000e+00> : vector<2x128xf32>
    %323 = tpu.matmul %322, %4, %cst_97 {dimension_numbers = #tpu.dot_dimension_numbers<[1], [0], [0], [1], [0, 0, 1, 1], [], []>} : vector<2x64xf32>, vector<64x128xf32>, vector<2x128xf32> -> vector<2x128xf32>
    %cst_98 = arith.constant dense<0.000000e+00> : vector<2x128xf32>
    %324 = tpu.matmul %309, %5, %cst_98 {dimension_numbers = #tpu.dot_dimension_numbers<[1], [0], [0], [1], [0, 0, 1, 1], [], []>} : vector<2x32xf32>, vector<32x128xf32>, vector<2x128xf32> -> vector<2x128xf32>
    %325 = arith.addf %323, %324 : vector<2x128xf32>
    %326 = vector.broadcast %6 : vector<1x128xf32> to vector<2x128xf32>
    %327 = arith.addf %325, %326 : vector<2x128xf32>
    %328 = vector.extract_strided_slice %327 {offsets = [0, 0], sizes = [2, 32], strides = [1, 1]} : vector<2x128xf32> to vector<2x32xf32>
    %329 = arith.negf %328 : vector<2x32xf32>
    %330 = math.exp %329 : vector<2x32xf32>
    %cst_99 = arith.constant 1.000000e+00 : f32
    %331 = vector.broadcast %cst_99 : f32 to vector<2x32xf32>
    %332 = arith.addf %331, %330 : vector<2x32xf32>
    %333 = arith.divf %331, %332 : vector<2x32xf32>
    %334 = vector.extract_strided_slice %327 {offsets = [0, 32], sizes = [2, 32], strides = [1, 1]} : vector<2x128xf32> to vector<2x32xf32>
    %335 = arith.negf %334 : vector<2x32xf32>
    %336 = math.exp %335 : vector<2x32xf32>
    %cst_100 = arith.constant 1.000000e+00 : f32
    %337 = vector.broadcast %cst_100 : f32 to vector<2x32xf32>
    %338 = arith.addf %337, %336 : vector<2x32xf32>
    %339 = arith.divf %337, %338 : vector<2x32xf32>
    %340 = vector.extract_strided_slice %327 {offsets = [0, 64], sizes = [2, 32], strides = [1, 1]} : vector<2x128xf32> to vector<2x32xf32>
    %341 = math.tanh %340 : vector<2x32xf32>
    %342 = vector.extract_strided_slice %327 {offsets = [0, 96], sizes = [2, 32], strides = [1, 1]} : vector<2x128xf32> to vector<2x32xf32>
    %343 = arith.negf %342 : vector<2x32xf32>
    %344 = math.exp %343 : vector<2x32xf32>
    %cst_101 = arith.constant 1.000000e+00 : f32
    %345 = vector.broadcast %cst_101 : f32 to vector<2x32xf32>
    %346 = arith.addf %345, %344 : vector<2x32xf32>
    %347 = arith.divf %345, %346 : vector<2x32xf32>
    %348 = arith.mulf %339, %307 : vector<2x32xf32>
    %349 = arith.mulf %333, %341 : vector<2x32xf32>
    %350 = arith.addf %348, %349 : vector<2x32xf32>
    %351 = math.tanh %350 : vector<2x32xf32>
    %352 = arith.mulf %347, %351 : vector<2x32xf32>
    %c8_i32 = arith.constant 8 : i32
    %c0_102 = arith.constant 0 : index
    %c0_103 = arith.constant 0 : index
    %353 = vector.load %arg8[%c0_102, %c0_103] : memref<32x8xf32, #tpu.memory_space<vmem>>, vector<32x8xf32>
    %cst_104 = arith.constant dense<0.000000e+00> : vector<2x8xf32>
    %354 = tpu.matmul %352, %353, %cst_104 {dimension_numbers = #tpu.dot_dimension_numbers<[1], [0], [0], [1], [0, 0, 1, 1], [], []>} : vector<2x32xf32>, vector<32x8xf32>, vector<2x8xf32> -> vector<2x8xf32>
    %c0_105 = arith.constant 0 : index
    %c0_106 = arith.constant 0 : index
    %355 = vector.load %arg9[%c0_105, %c0_106] : memref<1x8xf32, #tpu.memory_space<vmem>>, vector<1x8xf32>
    %356 = vector.broadcast %355 : vector<1x8xf32> to vector<2x8xf32>
    %357 = arith.addf %354, %356 : vector<2x8xf32>
    %c0_107 = arith.constant 0 : index
    %c0_108 = arith.constant 0 : index
    %358 = vector.load %arg10[%c0_107, %c0_108] : memref<2x8xf32, #tpu.memory_space<vmem>>, vector<2x8xf32>
    tpu.vector_store %arg10[%c0_107, %c0_108], %357 {strides = array<i32>} : memref<2x8xf32, #tpu.memory_space<vmem>>, vector<2x8xf32>,
    return
  }
}

</mosaic_0001>

<bundles_post_ra>
// kernel: tpu_custom_call.1
= control target key start
LH: loop header
LB: loop body
LE: loop exit
PB: predicated region body
PF: predicated region fallthrough
CT: control target
= control target key end

     0   :  { %15 = vsyncpa [#allocation3], 0  ;;  %s2043_s0 = inlined_call_operand.hbm [shape: f32[8,2,64], index: 0, kind: input, shape index: {}]   ;;  %s2044_s1 = inlined_call_operand.hbm [shape: f32[64,64], index: 1, kind: input, shape index: {}]   ;;  %s2045_s2 = inlined_call_operand.vmem [shape: f32[1,64], index: 2, kind: input, shape index: {}]   ;;  %s2046_s3 = inlined_call_operand.hbm [shape: f32[64,64], index: 3, kind: input, shape index: {}]   ;;  %s2047_s4 = inlined_call_operand.vmem [shape: f32[1,64], index: 4, kind: input, shape index: {}]   ;;  %s2048_s5 = inlined_call_operand.hbm [shape: f32[64,128], index: 5, kind: input, shape index: {}]   ;;  %s2049_s6 = inlined_call_operand.vmem [shape: f32[32,128], index: 6, kind: input, shape index: {}]   ;;  %s2050_s7 = inlined_call_operand.vmem [shape: f32[1,128], index: 7, kind: input, shape index: {}]   ;;  %s2051_s8 = inlined_call_operand.vmem [shape: f32[32,8], index: 8, kind: input, shape index: {}]   ;;  %s2052_s9 = inlined_call_operand.vmem [shape: f32[1,8], index: 9, kind: input, shape index: {}]   ;;  %s2053_s10 = inlined_call_operand.hbm [shape: f32[2,8], index: 10, kind: output, shape index: {}]  }
   0x1   :  { %16 = vsyncpa [#allocation6], 0 }
   0x2   :  { %17 = vsyncpa [#allocation9], 0  ;;  %s36_s15 = sshll.u32 %s2044_s1, 4  ;;  %s37_s15 = int_to_ptr.hbm [resolvable:$true] %s36_s15 }
   0x3   :  { %18 = vsyncpa [#allocation4], 0  ;;  %s1528_s16 = smov [#allocation5]   ;;  %s23_s20 = sshll.u32 %s2043_s0, 4  ;;  %s24_s20 = int_to_ptr.hbm [resolvable:$true] %s23_s20 }
   0x4   :  { %s38_s17 = sshll.u32 %s1528_s16, 4  ;;  %s1529_s21 = smov 128   ;;  %s39_s17 = int_to_ptr.vmem [resolvable:$true] %s38_s17 }
   0x5   :  { %s1530_s22 = smov 8   ;;  %s1531_s23 = smov [#allocation2]  }
   0x6   :  { %44 = dma.hbm_to_vmem [thread:$0]  %s37_s15, 1024, %s39_s17, [#allocation6], %s1529_s21, %s1529_s21, %s1530_s22  }
   0x7   :  { %s25_s24 = sshll.u32 %s1531_s23, 4  ;;  %s1532_s25 = smov 32   ;;  %s26_s24 = int_to_ptr.vmem [resolvable:$true] %s25_s24 }
   0x8   :  { %s1533_s26 = smov 2   ;;  %s51_s28 = sshll.u32 %s2046_s3, 4  ;;  %s52_s28 = int_to_ptr.hbm [resolvable:$true] %s51_s28 }
   0x9   :  { %31 = dma.hbm_to_vmem [thread:$0]  %s24_s20, 256, %s26_s24, [#allocation3], %s1532_s25, %s1532_s25, %s1533_s26  }
   0xa   :  { %s1534_s29 = smov [#allocation7]   ;;  %s66_s12 = sshll.u32 %s2048_s5, 4  ;;  %s67_s12 = int_to_ptr.hbm [resolvable:$true] %s66_s12 }
   0xb   :  { %s53_s30 = sshll.u32 %s1534_s29, 4  ;;  %s1535_s13 = smov [#allocation8]   ;;  %s54_s30 = int_to_ptr.vmem [resolvable:$true] %s53_s30 }
   0xc   :  { %59 = dma.hbm_to_vmem [thread:$0]  %s52_s28, 1024, %s54_s30, [#allocation6], %s1529_s21, %s1529_s21, %s1530_s22  }
   0xd   :  { %s68_s14 = sshll.u32 %s1535_s13, 4  ;;  %s69_s14 = int_to_ptr.vmem [resolvable:$true] %s68_s14 }
   0xe   :  { %74 = dma.hbm_to_vmem [thread:$0]  %s67_s12, 1024, %s69_s14, [#allocation9], %s1529_s21, %s1529_s21, %s1530_s22  }
   0xf   :  { %1520 = dma.done.wait [#allocation3], 256  }
  0x10   :  { %1521 = vsyncadd [#allocation3], 4294967040 }
  0x11   :  { %1522 = dma.done.wait [#allocation6], 2048  }
  0x12   :  { %1523 = vsyncadd [#allocation6], 4294965248 }
  0x13   :  { %1524 = dma.done.wait [#allocation9], 1024  }
  0x14   :  { %1525 = vsyncadd [#allocation9], 4294966272  ;;  %v1608_v0 = vld [vmem:[#allocation5 + $0x38] sm:$0xff]  ;;  %v1610_v1 = vld [vmem:[#allocation5 + $0x30] sm:$0xff]  ;;  %vm134_vm0 = vcmask 523264   ;;  %v1536_v33 = vmov 0.0  }
  0x15   :  { %146 = vmatpush.msra.mxu0 %v1608_v0  ;;  %v1613_v2 = vld [vmem:[#allocation5 + $0x28] sm:$0xff]  ;;  %v1616_v3 = vld [vmem:[#allocation7 + $0x38] sm:$0xff]  ;;  %v1618_v4 = vld [vmem:[#allocation7 + $0x30] sm:$0xff]  ;;  %s1537_s26 = smov 64   ;;  %vm186_vm5 = vcmask 261120   ;;  %s1538_s3 = smov [#allocation10]  }
  0x16   :  { %v1620_v5 = vld [vmem:[#allocation5 + $0x20] sm:$0xff]  ;;  %173 = vmatpush.msra.mxu1 %v1616_v3  ;;  %v1624_v6 = vld [vmem:[#allocation7 + $0x28] sm:$0xff]  ;;  %v1626_v7 = vld [vmem:[#allocation5 + $0x18] sm:$0xff]  ;;  %s1266_s5 = sshll.u32 %s1538_s3, 4  ;;  %s1268_s17 = sshll.u32 %s2053_s10, 4  ;;  %s1267_s5 = int_to_ptr.vmem [resolvable:$true] %s1266_s5  ;;  %s1269_s17 = int_to_ptr.hbm [resolvable:$true] %s1268_s17 }
  0x17   :  { %147 = vmatpush.msra.mxu0 %v1610_v1  ;;  %v1630_v8 = vld [vmem:[#allocation7 + $0x20] sm:$0xff]  ;;  %v1632_v9 = vld [vmem:[#allocation5 + $0x10] sm:$0xff]  ;;  %v1636_v10 = vld [vmem:[#allocation7 + $0x18] sm:$0xff] }
  0x18   :  { %174 = vmatpush.msra.mxu1 %v1618_v4  ;;  %v1638_v11 = vld [vmem:[#allocation5 + $0x8] sm:$0xff]  ;;  %v1642_v12 = vld [vmem:[#allocation5] sm:$0xff]  ;;  %v130_v13 = vld [vmem:[#allocation2] sm:$0x3] }
  0x19   :  { %148 = vmatpush.msra.mxu0 %v1613_v2  ;;  %v1653_v14 = vld [vmem:[#allocation7 + $0x10] sm:$0xff]  ;;  %v1657_v15 = vld [vmem:[#allocation7 + $0x8] sm:$0xff]  ;;  %v1661_v16 = vld [vmem:[#allocation7] sm:$0xff] }
  0x1a   :  { %175 = vmatpush.msra.mxu1 %v1624_v6  ;;  %v1665_v17 = vld [vmem:[#allocation8 + $0x38] sm:$0xff]  ;;  %v1667_v18 = vld [vmem:[#allocation8 + $0x30] sm:$0xff]  ;;  %v1673_v19 = vld [vmem:[%s2049_s6 + $0x18] sm:$0xff] }
  0x1b   :  { %149 = vmatpush.msra.mxu0 %v1620_v5  ;;  %221 = vmatpush.msra.mxu3 %v1665_v17  ;;  %v1675_v20 = vld [vmem:[#allocation8 + $0x28] sm:$0xff]  ;;  %v1681_v21 = vld [vmem:[#allocation8 + $0x20] sm:$0xff]  ;;  %v1684_v22 = vld [vmem:[#allocation8 + $0x18] sm:$0xff] }
  0x1c   :  { %176 = vmatpush.msra.mxu1 %v1630_v8  ;;  %202 = vmatpush.msra.mxu2 %v1673_v19  ;;  %v1691_v23 = vld [vmem:[%s2045_s2] ss:$0 sm:$0xff]  ;;  %v1698_v27 = vld [vmem:[%s2049_s6 + $0x10] sm:$0xff]  ;;  %v1707_v29 = vld [vmem:[%s2049_s6 + $0x8] sm:$0xff] }
  0x1d   :  { %150 = vmatpush.msra.mxu0 %v1626_v7  ;;  %222 = vmatpush.msra.mxu3 %v1667_v18  ;;  %v1700_v28 = vld [vmem:[#allocation8 + $0x10] sm:$0xff]  ;;  %v1709_v30 = vld [vmem:[#allocation8 + $0x8] sm:$0xff]  ;;  %v1720_v32 = vld [vmem:[#allocation8] sm:$0xff] }
  0x1e   :  { %177 = vmatpush.msra.mxu1 %v1636_v10  ;;  %203 = vmatpush.msra.mxu2 %v1698_v27  ;;  %v1718_v31 = vld [vmem:[%s2049_s6] sm:$0xff] }
  0x1f   :  { %151 = vmatpush.msra.mxu0 %v1632_v9  ;;  %223 = vmatpush.msra.mxu3 %v1675_v20  ;;  %v1759_v34 = vld [vmem:[%s2047_s4] ss:$0 sm:$0xff]  ;;  %v275_v47 = vld [vmem:[#allocation2 + $0x2] sm:$0x3] }
  0x20   :  { %178 = vmatpush.msra.mxu1 %v1653_v14  ;;  %204 = vmatpush.msra.mxu2 %v1707_v29  ;;  %v1778_v39 = vld [vmem:[%s2050_s7] ss:$0 sm:$0xff] }
  0x21   :  { %152 = vmatpush.msra.mxu0 %v1638_v11  ;;  %224 = vmatpush.msra.mxu3 %v1681_v21 }
  0x22   :  { %179 = vmatpush.msra.mxu1 %v1657_v15  ;;  %205 = vmatpush.msra.mxu2 %v1718_v31 }
  0x23   :  { %153 = vmatpush.msra.mxu0 %v1642_v12  ;;  %225 = vmatpush.msra.mxu3 %v1684_v22 }
  0x24   :  { %1280 = vmatmul.msk.f32.vlgmr.msra.gmra.mxu0 %vm134_vm0, %v130_v13  ;;  %180 = vmatpush.msra.mxu1 %v1661_v16 }
  0x25   :  { %311 = vmatpush.msrb.mxu0 %v1616_v3  ;;  %226 = vmatpush.msra.mxu3 %v1700_v28 }
  0x26   :  { %341 = vmatpush.msrb.mxu1 %v1673_v19  ;;  %206 = vmatmul.f32.vlgmr.msra.gmra.mxu2 %v1536_v33 }
  0x27   :  { %312 = vmatpush.msrb.mxu0 %v1618_v4  ;;  %227 = vmatpush.msra.mxu3 %v1709_v30 }
  0x28   :  { %342 = vmatpush.msrb.mxu1 %v1698_v27  ;;  %287 = vmatpush.msrb.mxu2 %v1608_v0 }
  0x29   :  { %313 = vmatpush.msrb.mxu0 %v1624_v6  ;;  %228 = vmatpush.msra.mxu3 %v1720_v32 }
  0x2a   :  { %343 = vmatpush.msrb.mxu1 %v1707_v29  ;;  %288 = vmatpush.msrb.mxu2 %v1610_v1 }
  0x2b   :  { %314 = vmatpush.msrb.mxu0 %v1630_v8  ;;  %360 = vmatpush.msrb.mxu3 %v1665_v17 }
  0x2c   :  { %344 = vmatpush.msrb.mxu1 %v1718_v31  ;;  %289 = vmatpush.msrb.mxu2 %v1613_v2 }
  0x2d   :  { %315 = vmatpush.msrb.mxu0 %v1636_v10  ;;  %361 = vmatpush.msrb.mxu3 %v1667_v18 }
  0x2e   :  { %290 = vmatpush.msrb.mxu2 %v1620_v5 }
  0x2f   :  { %316 = vmatpush.msrb.mxu0 %v1653_v14  ;;  %362 = vmatpush.msrb.mxu3 %v1675_v20 }
  0x30   :  { %291 = vmatpush.msrb.mxu2 %v1626_v7 }
  0x31   :  { %317 = vmatpush.msrb.mxu0 %v1657_v15  ;;  %363 = vmatpush.msrb.mxu3 %v1681_v21 }
  0x32   :  { %292 = vmatpush.msrb.mxu2 %v1632_v9 }
  0x33   :  { %318 = vmatpush.msrb.mxu0 %v1661_v16  ;;  %364 = vmatpush.msrb.mxu3 %v1684_v22 }
  0x34   :  { %293 = vmatpush.msrb.mxu2 %v1638_v11 }
  0x35   :  { %477 = vmatpush.msra.mxu0 %v1673_v19  ;;  %365 = vmatpush.msrb.mxu3 %v1700_v28 }
  0x36   :  { %294 = vmatpush.msrb.mxu2 %v1642_v12 }
  0x37   :  { %478 = vmatpush.msra.mxu0 %v1698_v27  ;;  %366 = vmatpush.msrb.mxu3 %v1709_v30 }
  0x38   :  { %447 = vmatpush.msra.mxu2 %v1616_v3 }
  0x39   :  { %479 = vmatpush.msra.mxu0 %v1707_v29  ;;  %367 = vmatpush.msrb.mxu3 %v1720_v32 }
  0x3a   :  { %448 = vmatpush.msra.mxu2 %v1618_v4 }
  0x3b   :  { %480 = vmatpush.msra.mxu0 %v1718_v31  ;;  %1284 = vmatmul.msk.f32.vlgmr.msrb.gmra.mxu2 %vm134_vm0, %v275_v47 }
  0x3c   :  { %449 = vmatpush.msra.mxu2 %v1624_v6 }
  0x3e   :  { %450 = vmatpush.msra.mxu2 %v1630_v8 }
  0x40   :  { %451 = vmatpush.msra.mxu2 %v1636_v10 }
  0x42   :  { %452 = vmatpush.msra.mxu2 %v1653_v14 }
  0x44   :  { %453 = vmatpush.msra.mxu2 %v1657_v15 }
  0x46   :  { %454 = vmatpush.msra.mxu2 %v1661_v16 }
  0x48   :  { %613 = vmatpush.msrb.mxu2 %v1673_v19 }
  0x4a   :  { %614 = vmatpush.msrb.mxu2 %v1698_v27 }
  0x4c   :  { %615 = vmatpush.msrb.mxu2 %v1707_v29 }
  0x4e   :  { %616 = vmatpush.msrb.mxu2 %v1718_v31 }
  0xa1   :  { %v155_v24 = vpop.f32.mrf.mxu0 }
  0xa2   :  { %v156_v25 = vadd.f32 %v1691_v23, %v155_v24 }
  0xa4   :  { %v158_v26 = vmax.f32 %v156_v25, 0.0 }
  0xa6   :  { %1281 = vmatmul.msk.f32.vlgmr.msra.gmra.mxu1 %vm134_vm0, %v158_v26 }
  0xa7   :  { %423 = vmatpush.msra.mxu1 %v1608_v0 }
  0xa9   :  { %424 = vmatpush.msra.mxu1 %v1610_v1  ;;  %v207_v38 = vpop.f32.mrf.mxu2 }
  0xab   :  { %425 = vmatpush.msra.mxu1 %v1613_v2 }
  0xad   :  { %426 = vmatpush.msra.mxu1 %v1620_v5 }
  0xaf   :  { %427 = vmatpush.msra.mxu1 %v1626_v7 }
  0xb1   :  { %428 = vmatpush.msra.mxu1 %v1632_v9 }
  0xb3   :  { %429 = vmatpush.msra.mxu1 %v1638_v11 }
  0xb5   :  { %430 = vmatpush.msra.mxu1 %v1642_v12 }
  0xbe   :  { %v296_v60 = vpop.f32.mrf.mxu2 }
  0xbf   :  { %v297_v61 = vadd.f32 %v1691_v23, %v296_v60 }
  0xc1   :  { %v299_v62 = vmax.f32 %v297_v61, 0.0 }
  0xc3   :  { %1285 = vmatmul.msk.f32.vlgmr.msrb.gmra.mxu0 %vm134_vm0, %v299_v62 }
  0xc4   :  { %559 = vmatpush.msrb.mxu0 %v1608_v0 }
  0xc6   :  { %560 = vmatpush.msrb.mxu0 %v1610_v1 }
  0xc8   :  { %561 = vmatpush.msrb.mxu0 %v1613_v2 }
  0xca   :  { %562 = vmatpush.msrb.mxu0 %v1620_v5 }
  0xcc   :  { %563 = vmatpush.msrb.mxu0 %v1626_v7 }
  0xce   :  { %564 = vmatpush.msrb.mxu0 %v1632_v9 }
  0xd0   :  { %565 = vmatpush.msrb.mxu0 %v1638_v11 }
  0xd2   :  { %566 = vmatpush.msrb.mxu0 %v1642_v12 }
 0x123   :  { %v182_v35 = vpop.f32.mrf.mxu1 }
 0x124   :  { %v183_v36 = vadd.f32 %v1759_v34, %v182_v35 }
 0x126   :  { %v185_v37 = vmax.f32 %v183_v36, 0.0 }
 0x128   :  { %1282 = vmatmul.msk.f32.vlgmr.msra.gmra.mxu3 %vm134_vm0, %v185_v37 }
 0x129   :  { %496 = vmatpush.msra.mxu3 %v1665_v17 }
 0x12b   :  { %497 = vmatpush.msra.mxu3 %v1667_v18 }
 0x12d   :  { %498 = vmatpush.msra.mxu3 %v1675_v20 }
 0x12f   :  { %499 = vmatpush.msra.mxu3 %v1681_v21 }
 0x131   :  { %500 = vmatpush.msra.mxu3 %v1684_v22 }
 0x133   :  { %501 = vmatpush.msra.mxu3 %v1700_v28 }
 0x135   :  { %502 = vmatpush.msra.mxu3 %v1709_v30 }
 0x137   :  { %503 = vmatpush.msra.mxu3 %v1720_v32 }
 0x140   :  { %v320_v26 = vpop.f32.mrf.mxu0 }
 0x141   :  { %v321_v33 = vadd.f32 %v1759_v34, %v320_v26 }
 0x143   :  { %v323_v35 = vmax.f32 %v321_v33, 0.0 }
 0x145   :  { %1287 = vmatmul.msk.f32.vlgmr.msrb.gmra.mxu3 %vm134_vm0, %v323_v35 }
 0x146   :  { %695 = vmatpush.msrb.mxu3 %v1608_v0 }
 0x148   :  { %696 = vmatpush.msrb.mxu3 %v1610_v1 }
 0x14a   :  { %697 = vmatpush.msrb.mxu3 %v1613_v2 }
 0x14c   :  { %698 = vmatpush.msrb.mxu3 %v1620_v5 }
 0x14e   :  { %699 = vmatpush.msrb.mxu3 %v1626_v7 }
 0x150   :  { %700 = vmatpush.msrb.mxu3 %v1632_v9 }
 0x152   :  { %701 = vmatpush.msrb.mxu3 %v1638_v11 }
 0x154   :  { %702 = vmatpush.msrb.mxu3 %v1642_v12 }
 0x1ab   :  { %v230_v40 = vpop.f32.mrf.mxu3 }
 0x1ac   :  { %v231_v41 = vadd.f32 %v230_v40, %v207_v38 }
 0x1ae   :  { %v236_v42 = vadd.f32 %v1778_v39, %v231_v41 }
 0x1b0   :  { %1335 = vtanh.f32 %v236_v42  ;;  %v1283_v44 = vmul.f32 -1.442695, %v236_v42 }
 0x1b2   :  { %1337 = vpow2.f32 %v1283_v44 }
 0x1b6   :  { %v1336_v43 = vpop.eup %1335 }
 0x1b7   :  { %259 = vrot.lane.b32.xlu0 %v1336_v43, %s1537_s26 }
 0x1b8   :  { %v1338_v45 = vpop.eup %1337 }
 0x1b9   :  { %v240_v46 = vadd.f32 1.0, %v1338_v45 }
 0x1bb   :  { %1339 = vrcp.f32 %v240_v46  ;;  %v252_v53 = vand.u32 2147483648, %v240_v46  ;;  %vm246_vm2 = vweird.f32 %v240_v46  ;;  %v250_v54 = vand.u32 2147483647, %v240_v46 }
 0x1bd   :  { %v253_v56 = vor.u32 1.1754944e-38, %v252_v53  ;;  %vm251_vm4 = vcmp.eq.f32.partialorder %v250_v54, 8.507059e+37 }
 0x1c1   :  { %v1340_v48 = vpop.eup %1339 }
 0x1c2   :  { %v242_v49 = vmul.f32 %v1340_v48, %v240_v46  ;;  %vm247_vm1 = vweird.f32 %v1340_v48 }
 0x1c3   :  { %vm248_vm3 = vmor %vm246_vm2, %vm247_vm1 }
 0x1c4   :  { %v243_v50 = vsub.f32 1.0, %v242_v49 }
 0x1c6   :  { %v244_v51 = vmul.f32 %v1340_v48, %v243_v50 }
 0x1c8   :  { %v245_v52 = vadd.f32 %v1340_v48, %v244_v51  ;;  %v369_v40 = vpop.f32.mrf.mxu3 }
 0x1ca   :  { %v249_v55 = vsel %vm248_vm3, %v1340_v48, %v245_v52  ;;  %v411_v48 = vld [vmem:[#allocation2 + $0x4] sm:$0x3] }
 0x1cb   :  { %v254_v58 = vsel %vm251_vm4, %v253_v56, %v249_v55 }
 0x1cc   :  { %v257_v63 = vmul.f32 0.0, %v254_v58 }
 0x229   :  { %v260_v57 = vpop.permute.xlu0 %259 }
 0x22a   :  { %v262_v59 = vmul.f32 %v260_v57, %v254_v58 }
 0x22c   :  { %264 = vrot.lane.b32.xlu0 %v262_v59, %s1532_s25 }
 0x29e   :  { %v265_v13 = vpop.permute.xlu0 %264 }
 0x29f   :  { %v1795_v24 = vadd.f32 %v265_v13, %v257_v63 }
 0x2a1   :  { %1341 = vtanh.f32 %v1795_v24 }
 0x2a7   :  { %v1342_v25 = vpop.eup %1341 }
 0x2a8   :  { %270 = vrot.lane.b32.xlu1 %v1342_v25, %s1537_s26 }
 0x31a   :  { %v271_v36 = vpop.permute.xlu1 %270 }
 0x31b   :  { %v273_v37 = vmul.f32 %v271_v36, %v254_v58 }
 0x31d   :  { %325 = vrot.lane.b32.xlu1 %v273_v37, %s1532_s25 }
 0x38f   :  { %v326_v38 = vpop.permute.xlu1 %325 }
 0x390   :  { %1286 = vmatmul.msk.f32.vlgmr.msrb.gmra.mxu1 %vm186_vm5, %v326_v38 }
 0x391   :  { %583 = vmatpush.msrb.mxu1 %v1616_v3 }
 0x393   :  { %584 = vmatpush.msrb.mxu1 %v1618_v4 }
 0x395   :  { %585 = vmatpush.msrb.mxu1 %v1624_v6 }
 0x397   :  { %586 = vmatpush.msrb.mxu1 %v1630_v8 }
 0x398   :  { %1289 = vmatmul.msk.f32.vlgmr.msra.gmra.mxu1 %vm134_vm0, %v411_v48 }
 0x399   :  { %587 = vmatpush.msrb.mxu1 %v1636_v10 }
 0x39b   :  { %588 = vmatpush.msrb.mxu1 %v1653_v14 }
 0x39d   :  { %589 = vmatpush.msrb.mxu1 %v1657_v15 }
 0x39f   :  { %590 = vmatpush.msrb.mxu1 %v1661_v16 }
 0x3a1   :  { %749 = vmatpush.msra.mxu1 %v1673_v19 }
 0x3a3   :  { %750 = vmatpush.msra.mxu1 %v1698_v27 }
 0x3a5   :  { %751 = vmatpush.msra.mxu1 %v1707_v29 }
 0x3a7   :  { %752 = vmatpush.msra.mxu1 %v1718_v31 }
 0x40d   :  { %v346_v41 = vpop.f32.mrf.mxu1 }
 0x40e   :  { %v370_v42 = vadd.f32 %v369_v40, %v346_v41 }
 0x410   :  { %v372_v43 = vadd.f32 %v1778_v39, %v370_v42 }
 0x412   :  { %1343 = vtanh.f32 %v372_v43  ;;  %v1288_v45 = vmul.f32 -1.442695, %v372_v43 }
 0x414   :  { %1345 = vpow2.f32 %v1288_v45 }
 0x415   :  { %v432_v13 = vpop.f32.mrf.mxu1 }
 0x416   :  { %v433_v25 = vadd.f32 %v1691_v23, %v432_v13 }
 0x418   :  { %v1344_v44 = vpop.eup %1343  ;;  %v435_v26 = vmax.f32 %v433_v25, 0.0 }
 0x419   :  { %395 = vrot.lane.b32.xlu2 %v1344_v44, %s1537_s26 }
 0x41a   :  { %v1346_v46 = vpop.eup %1345  ;;  %1290 = vmatmul.msk.f32.vlgmr.msra.gmra.mxu2 %vm134_vm0, %v435_v26 }
 0x41b   :  { %v376_v47 = vadd.f32 1.0, %v1346_v46  ;;  %632 = vmatpush.msra.mxu2 %v1665_v17 }
 0x41d   :  { %1347 = vrcp.f32 %v376_v47  ;;  %v388_v54 = vand.u32 2147483648, %v376_v47  ;;  %vm382_vm7 = vweird.f32 %v376_v47  ;;  %v386_v55 = vand.u32 2147483647, %v376_v47  ;;  %633 = vmatpush.msra.mxu2 %v1667_v18 }
 0x41f   :  { %v389_v57 = vor.u32 1.1754944e-38, %v388_v54  ;;  %vm387_vm9 = vcmp.eq.f32.partialorder %v386_v55, 8.507059e+37  ;;  %634 = vmatpush.msra.mxu2 %v1675_v20 }
 0x421   :  { %635 = vmatpush.msra.mxu2 %v1681_v21 }
 0x423   :  { %v1348_v49 = vpop.eup %1347  ;;  %636 = vmatpush.msra.mxu2 %v1684_v22 }
 0x424   :  { %v378_v50 = vmul.f32 %v1348_v49, %v376_v47  ;;  %vm383_vm6 = vweird.f32 %v1348_v49 }
 0x425   :  { %vm384_vm8 = vmor %vm382_vm7, %vm383_vm6  ;;  %637 = vmatpush.msra.mxu2 %v1700_v28 }
 0x426   :  { %v379_v51 = vsub.f32 1.0, %v378_v50 }
 0x427   :  { %638 = vmatpush.msra.mxu2 %v1709_v30 }
 0x428   :  { %v380_v52 = vmul.f32 %v1348_v49, %v379_v51 }
 0x429   :  { %639 = vmatpush.msra.mxu2 %v1720_v32 }
 0x42a   :  { %v381_v53 = vadd.f32 %v1348_v49, %v380_v52 }
 0x42c   :  { %v385_v56 = vsel %vm384_vm8, %v1348_v49, %v381_v53  ;;  %v547_v49 = vld [vmem:[#allocation2 + $0x6] sm:$0x3] }
 0x42d   :  { %v390_v59 = vsel %vm387_vm9, %v389_v57, %v385_v56 }
 0x42e   :  { %v393_v61 = vmul.f32 %v390_v59, %v1795_v24 }
 0x473   :  { %v396_v58 = vpop.permute.xlu2 %395 }
 0x474   :  { %v398_v60 = vmul.f32 %v396_v58, %v390_v59 }
 0x476   :  { %400 = vrot.lane.b32.xlu2 %v398_v60, %s1532_s25 }
 0x49d   :  { %v456_v36 = vpop.f32.mrf.mxu2 }
 0x49e   :  { %v457_v37 = vadd.f32 %v1759_v34, %v456_v36 }
 0x4a0   :  { %v459_v38 = vmax.f32 %v457_v37, 0.0 }
 0x4a2   :  { %1292 = vmatmul.msk.f32.vlgmr.msra.gmra.mxu3 %vm134_vm0, %v459_v38 }
 0x4a3   :  { %855 = vmatpush.msra.mxu3 %v1616_v3 }
 0x4a5   :  { %856 = vmatpush.msra.mxu3 %v1618_v4 }
 0x4a7   :  { %857 = vmatpush.msra.mxu3 %v1624_v6 }
 0x4a9   :  { %858 = vmatpush.msra.mxu3 %v1630_v8 }
 0x4ab   :  { %859 = vmatpush.msra.mxu3 %v1636_v10 }
 0x4ad   :  { %860 = vmatpush.msra.mxu3 %v1653_v14 }
 0x4af   :  { %861 = vmatpush.msra.mxu3 %v1657_v15 }
 0x4b1   :  { %862 = vmatpush.msra.mxu3 %v1661_v16 }
 0x4d0   :  { %v401_v62 = vpop.permute.xlu2 %400 }
 0x4d1   :  { %v1831_v63 = vadd.f32 %v401_v62, %v393_v61 }
 0x4d3   :  { %1349 = vtanh.f32 %v1831_v63 }
 0x4d9   :  { %v1350_v33 = vpop.eup %1349 }
 0x4da   :  { %406 = vrot.lane.b32.xlu0 %v1350_v33, %s1537_s26 }
 0x525   :  { %v505_v41 = vpop.f32.mrf.mxu3 }
 0x54c   :  { %v407_v24 = vpop.permute.xlu0 %406 }
 0x54d   :  { %v409_v35 = vmul.f32 %v407_v24, %v390_v59 }
 0x54f   :  { %461 = vrot.lane.b32.xlu1 %v409_v35, %s1532_s25 }
 0x5c1   :  { %v462_v40 = vpop.permute.xlu1 %461 }
 0x5c2   :  { %1291 = vmatmul.msk.f32.vlgmr.msra.gmra.mxu0 %vm186_vm5, %v462_v40 }
 0x5c3   :  { %719 = vmatpush.msra.mxu0 %v1616_v3 }
 0x5c5   :  { %720 = vmatpush.msra.mxu0 %v1618_v4 }
 0x5c7   :  { %721 = vmatpush.msra.mxu0 %v1624_v6 }
 0x5c9   :  { %722 = vmatpush.msra.mxu0 %v1630_v8 }
 0x5ca   :  { %1294 = vmatmul.msk.f32.vlgmr.msrb.gmra.mxu0 %vm134_vm0, %v547_v49 }
 0x5cb   :  { %723 = vmatpush.msra.mxu0 %v1636_v10 }
 0x5cd   :  { %724 = vmatpush.msra.mxu0 %v1653_v14 }
 0x5cf   :  { %725 = vmatpush.msra.mxu0 %v1657_v15 }
 0x5d1   :  { %726 = vmatpush.msra.mxu0 %v1661_v16 }
 0x5d3   :  { %885 = vmatpush.msrb.mxu0 %v1673_v19 }
 0x5d5   :  { %886 = vmatpush.msrb.mxu0 %v1698_v27 }
 0x5d7   :  { %887 = vmatpush.msrb.mxu0 %v1707_v29 }
 0x5d9   :  { %888 = vmatpush.msrb.mxu0 %v1718_v31 }
 0x63f   :  { %v482_v42 = vpop.f32.mrf.mxu0 }
 0x640   :  { %v506_v43 = vadd.f32 %v505_v41, %v482_v42 }
 0x642   :  { %v508_v44 = vadd.f32 %v1778_v39, %v506_v43 }
 0x644   :  { %1351 = vtanh.f32 %v508_v44  ;;  %v1293_v46 = vmul.f32 -1.442695, %v508_v44 }
 0x646   :  { %1353 = vpow2.f32 %v1293_v46 }
 0x647   :  { %v568_v62 = vpop.f32.mrf.mxu0 }
 0x648   :  { %v569_v13 = vadd.f32 %v1691_v23, %v568_v62 }
 0x64a   :  { %v1352_v45 = vpop.eup %1351  ;;  %v571_v25 = vmax.f32 %v569_v13, 0.0 }
 0x64b   :  { %531 = vrot.lane.b32.xlu2 %v1352_v45, %s1537_s26 }
 0x64c   :  { %v1354_v47 = vpop.eup %1353  ;;  %1295 = vmatmul.msk.f32.vlgmr.msrb.gmra.mxu1 %vm134_vm0, %v571_v25 }
 0x64d   :  { %v512_v48 = vadd.f32 1.0, %v1354_v47  ;;  %768 = vmatpush.msrb.mxu1 %v1665_v17 }
 0x64f   :  { %1355 = vrcp.f32 %v512_v48  ;;  %v524_v55 = vand.u32 2147483648, %v512_v48  ;;  %vm518_vm11 = vweird.f32 %v512_v48  ;;  %v522_v56 = vand.u32 2147483647, %v512_v48  ;;  %769 = vmatpush.msrb.mxu1 %v1667_v18 }
 0x651   :  { %v525_v58 = vor.u32 1.1754944e-38, %v524_v55  ;;  %vm523_vm13 = vcmp.eq.f32.partialorder %v522_v56, 8.507059e+37  ;;  %770 = vmatpush.msrb.mxu1 %v1675_v20 }
 0x653   :  { %771 = vmatpush.msrb.mxu1 %v1681_v21 }
 0x655   :  { %v1356_v50 = vpop.eup %1355  ;;  %772 = vmatpush.msrb.mxu1 %v1684_v22 }
 0x656   :  { %v514_v51 = vmul.f32 %v1356_v50, %v512_v48  ;;  %vm519_vm10 = vweird.f32 %v1356_v50 }
 0x657   :  { %vm520_vm12 = vmor %vm518_vm11, %vm519_vm10  ;;  %773 = vmatpush.msrb.mxu1 %v1700_v28 }
 0x658   :  { %v515_v52 = vsub.f32 1.0, %v514_v51 }
 0x659   :  { %774 = vmatpush.msrb.mxu1 %v1709_v30 }
 0x65a   :  { %v516_v53 = vmul.f32 %v1356_v50, %v515_v52 }
 0x65b   :  { %775 = vmatpush.msrb.mxu1 %v1720_v32 }
 0x65c   :  { %v517_v54 = vadd.f32 %v1356_v50, %v516_v53 }
 0x65e   :  { %v521_v57 = vsel %vm520_vm12, %v1356_v50, %v517_v54  ;;  %v683_v50 = vld [vmem:[#allocation2 + $0x8] sm:$0x3] }
 0x65f   :  { %v526_v60 = vsel %vm523_vm13, %v525_v58, %v521_v57  ;;  %1299 = vmatmul.msk.f32.vlgmr.msrb.gmra.mxu3 %vm134_vm0, %v683_v50 }
 0x660   :  { %v529_v26 = vmul.f32 %v526_v60, %v1831_v63  ;;  %1021 = vmatpush.msrb.mxu3 %v1673_v19 }
 0x662   :  { %1022 = vmatpush.msrb.mxu3 %v1698_v27 }
 0x664   :  { %1023 = vmatpush.msrb.mxu3 %v1707_v29 }
 0x666   :  { %1024 = vmatpush.msrb.mxu3 %v1718_v31 }
 0x6a5   :  { %v532_v59 = vpop.permute.xlu2 %531 }
 0x6a6   :  { %v534_v61 = vmul.f32 %v532_v59, %v526_v60 }
 0x6a8   :  { %536 = vrot.lane.b32.xlu0 %v534_v61, %s1532_s25 }
 0x6c9   :  { %v592_v38 = vpop.f32.mrf.mxu1 }
 0x6ca   :  { %v593_v63 = vadd.f32 %v1759_v34, %v592_v38 }
 0x6cc   :  { %v595_v41 = vmax.f32 %v593_v63, 0.0 }
 0x6e2   :  { %v704_v13 = vpop.f32.mrf.mxu3 }
 0x6e3   :  { %v705_v25 = vadd.f32 %v1691_v23, %v704_v13 }
 0x71a   :  { %v537_v33 = vpop.permute.xlu0 %536 }
 0x71b   :  { %v1884_v24 = vadd.f32 %v537_v33, %v529_v26  ;;  %v707_v26 = vmax.f32 %v705_v25, 0.0 }
 0x71d   :  { %1357 = vtanh.f32 %v1884_v24  ;;  %1300 = vmatmul.msk.f32.vlgmr.msra.gmra.mxu0 %vm134_vm0, %v707_v26 }
 0x71e   :  { %904 = vmatpush.msra.mxu0 %v1665_v17 }
 0x720   :  { %905 = vmatpush.msra.mxu0 %v1667_v18 }
 0x722   :  { %906 = vmatpush.msra.mxu0 %v1675_v20 }
 0x723   :  { %v1358_v35 = vpop.eup %1357 }
 0x724   :  { %542 = vrot.lane.b32.xlu1 %v1358_v35, %s1537_s26  ;;  %907 = vmatpush.msra.mxu0 %v1681_v21 }
 0x726   :  { %908 = vmatpush.msra.mxu0 %v1684_v22 }
 0x728   :  { %909 = vmatpush.msra.mxu0 %v1700_v28 }
 0x72a   :  { %910 = vmatpush.msra.mxu0 %v1709_v30 }
 0x72c   :  { %911 = vmatpush.msra.mxu0 %v1720_v32 }
 0x796   :  { %v543_v36 = vpop.permute.xlu1 %542 }
 0x797   :  { %v545_v37 = vmul.f32 %v543_v36, %v526_v60 }
 0x799   :  { %597 = vrot.lane.b32.xlu2 %v545_v37, %s1532_s25 }
 0x7f3   :  { %v598_v40 = vpop.permute.xlu2 %597 }
 0x7f4   :  { %1296 = vmatmul.msk.f32.vlgmr.msrb.gmra.mxu2 %vm186_vm5, %v598_v40 }
 0x7f5   :  { %831 = vmatpush.msrb.mxu2 %v1608_v0 }
 0x7f7   :  { %832 = vmatpush.msrb.mxu2 %v1610_v1 }
 0x7f9   :  { %833 = vmatpush.msrb.mxu2 %v1613_v2 }
 0x7fb   :  { %834 = vmatpush.msrb.mxu2 %v1620_v5 }
 0x7fc   :  { %1297 = vmatmul.msk.f32.vlgmr.msra.gmra.mxu2 %vm134_vm0, %v595_v41 }
 0x7fd   :  { %835 = vmatpush.msrb.mxu2 %v1626_v7 }
 0x7ff   :  { %836 = vmatpush.msrb.mxu2 %v1632_v9 }
 0x801   :  { %837 = vmatpush.msrb.mxu2 %v1638_v11 }
 0x803   :  { %838 = vmatpush.msrb.mxu2 %v1642_v12 }
 0x805   :  { %991 = vmatpush.msra.mxu2 %v1616_v3 }
 0x807   :  { %992 = vmatpush.msra.mxu2 %v1618_v4 }
 0x809   :  { %993 = vmatpush.msra.mxu2 %v1624_v6 }
 0x80b   :  { %994 = vmatpush.msra.mxu2 %v1630_v8 }
 0x80d   :  { %995 = vmatpush.msra.mxu2 %v1636_v10 }
 0x80f   :  { %996 = vmatpush.msra.mxu2 %v1653_v14 }
 0x811   :  { %997 = vmatpush.msra.mxu2 %v1657_v15 }
 0x813   :  { %998 = vmatpush.msra.mxu2 %v1661_v16 }
 0x877   :  { %v618_v42 = vpop.f32.mrf.mxu2 }
 0x87f   :  { %v641_v43 = vpop.f32.mrf.mxu2 }
 0x880   :  { %v642_v44 = vadd.f32 %v641_v43, %v618_v42 }
 0x882   :  { %v644_v45 = vadd.f32 %v1778_v39, %v642_v44 }
 0x884   :  { %1359 = vtanh.f32 %v644_v45  ;;  %v1298_v47 = vmul.f32 -1.442695, %v644_v45 }
 0x886   :  { %1361 = vpow2.f32 %v1298_v47 }
 0x88a   :  { %v1360_v46 = vpop.eup %1359 }
 0x88b   :  { %667 = vrot.lane.b32.xlu0 %v1360_v46, %s1537_s26 }
 0x88c   :  { %v1362_v48 = vpop.eup %1361 }
 0x88d   :  { %v648_v49 = vadd.f32 1.0, %v1362_v48 }
 0x88f   :  { %1363 = vrcp.f32 %v648_v49  ;;  %v660_v56 = vand.u32 2147483648, %v648_v49  ;;  %vm654_vm15 = vweird.f32 %v648_v49  ;;  %v658_v57 = vand.u32 2147483647, %v648_v49 }
 0x891   :  { %v661_v59 = vor.u32 1.1754944e-38, %v660_v56  ;;  %vm659_vm2 = vcmp.eq.f32.partialorder %v658_v57, 8.507059e+37 }
 0x895   :  { %v1364_v51 = vpop.eup %1363 }
 0x896   :  { %v650_v52 = vmul.f32 %v1364_v51, %v648_v49  ;;  %vm655_vm14 = vweird.f32 %v1364_v51 }
 0x897   :  { %vm656_vm1 = vmor %vm654_vm15, %vm655_vm14 }
 0x898   :  { %v651_v53 = vsub.f32 1.0, %v650_v52 }
 0x89a   :  { %v652_v54 = vmul.f32 %v1364_v51, %v651_v53 }
 0x89c   :  { %v653_v55 = vadd.f32 %v1364_v51, %v652_v54 }
 0x89e   :  { %v657_v58 = vsel %vm656_vm1, %v1364_v51, %v653_v55 }
 0x89f   :  { %v662_v61 = vsel %vm659_vm2, %v661_v59, %v657_v58 }
 0x8a0   :  { %v665_v33 = vmul.f32 %v662_v61, %v1884_v24  ;;  %v728_v24 = vpop.f32.mrf.mxu0 }
 0x8a1   :  { %v729_v41 = vadd.f32 %v1759_v34, %v728_v24 }
 0x8a3   :  { %v731_v42 = vmax.f32 %v729_v41, 0.0 }
 0x8fd   :  { %v668_v60 = vpop.permute.xlu0 %667 }
 0x8fe   :  { %v670_v62 = vmul.f32 %v668_v60, %v662_v61 }
 0x900   :  { %672 = vrot.lane.b32.xlu1 %v670_v62, %s1532_s25 }
 0x972   :  { %v673_v35 = vpop.permute.xlu1 %672 }
 0x973   :  { %v1924_v36 = vadd.f32 %v673_v35, %v665_v33 }
 0x975   :  { %1365 = vtanh.f32 %v1924_v36 }
 0x97b   :  { %v1366_v37 = vpop.eup %1365 }
 0x97c   :  { %678 = vrot.lane.b32.xlu2 %v1366_v37, %s1537_s26 }
 0x9d6   :  { %v679_v38 = vpop.permute.xlu2 %678 }
 0x9d7   :  { %v681_v40 = vmul.f32 %v679_v38, %v662_v61 }
 0x9d9   :  { %733 = vrot.lane.b32.xlu0 %v681_v40, %s1532_s25 }
 0xa4b   :  { %v734_v63 = vpop.permute.xlu0 %733 }
 0xa4c   :  { %1301 = vmatmul.msk.f32.vlgmr.msra.gmra.mxu1 %vm186_vm5, %v734_v63 }
 0xa4d   :  { %967 = vmatpush.msra.mxu1 %v1608_v0 }
 0xa4f   :  { %968 = vmatpush.msra.mxu1 %v1610_v1 }
 0xa51   :  { %969 = vmatpush.msra.mxu1 %v1613_v2 }
 0xa53   :  { %970 = vmatpush.msra.mxu1 %v1620_v5 }
 0xa54   :  { %1302 = vmatmul.msk.f32.vlgmr.msrb.gmra.mxu1 %vm134_vm0, %v731_v42 }
 0xa55   :  { %971 = vmatpush.msra.mxu1 %v1626_v7 }
 0xa57   :  { %972 = vmatpush.msra.mxu1 %v1632_v9 }
 0xa59   :  { %973 = vmatpush.msra.mxu1 %v1638_v11 }
 0xa5b   :  { %974 = vmatpush.msra.mxu1 %v1642_v12 }
 0xa5d   :  { %1127 = vmatpush.msrb.mxu1 %v1616_v3 }
 0xa5f   :  { %1128 = vmatpush.msrb.mxu1 %v1618_v4 }
 0xa61   :  { %1129 = vmatpush.msrb.mxu1 %v1624_v6 }
 0xa63   :  { %1130 = vmatpush.msrb.mxu1 %v1630_v8 }
 0xa65   :  { %1131 = vmatpush.msrb.mxu1 %v1636_v10  ;;  %v819_v10 = vld [vmem:[#allocation2 + $0xa] sm:$0x3] }
 0xa66   :  { %1304 = vmatmul.msk.f32.vlgmr.msrb.gmra.mxu2 %vm134_vm0, %v819_v10 }
 0xa67   :  { %1132 = vmatpush.msrb.mxu1 %v1653_v14  ;;  %1157 = vmatpush.msrb.mxu2 %v1673_v19 }
 0xa69   :  { %1133 = vmatpush.msrb.mxu1 %v1657_v15  ;;  %1158 = vmatpush.msrb.mxu2 %v1698_v27 }
 0xa6b   :  { %1134 = vmatpush.msrb.mxu1 %v1661_v16  ;;  %1159 = vmatpush.msrb.mxu2 %v1707_v29 }
 0xa6d   :  { %1160 = vmatpush.msrb.mxu2 %v1718_v31 }
 0xac9   :  { %v754_v43 = vpop.f32.mrf.mxu1 }
 0xad1   :  { %v777_v44 = vpop.f32.mrf.mxu1 }
 0xad2   :  { %v778_v45 = vadd.f32 %v777_v44, %v754_v43 }
 0xad4   :  { %v780_v46 = vadd.f32 %v1778_v39, %v778_v45 }
 0xad6   :  { %1367 = vtanh.f32 %v780_v46  ;;  %v1303_v4 = vmul.f32 -1.442695, %v780_v46 }
 0xad8   :  { %1369 = vpow2.f32 %v1303_v4 }
 0xadc   :  { %v1368_v3 = vpop.eup %1367 }
 0xadd   :  { %803 = vrot.lane.b32.xlu1 %v1368_v3, %s1537_s26 }
 0xade   :  { %v1370_v6 = vpop.eup %1369 }
 0xadf   :  { %v784_v8 = vadd.f32 1.0, %v1370_v6 }
 0xae1   :  { %1371 = vrcp.f32 %v784_v8  ;;  %v796_v49 = vand.u32 2147483648, %v784_v8  ;;  %vm790_vm4 = vweird.f32 %v784_v8  ;;  %v794_v50 = vand.u32 2147483647, %v784_v8 }
 0xae3   :  { %v797_v52 = vor.u32 1.1754944e-38, %v796_v49  ;;  %vm795_vm7 = vcmp.eq.f32.partialorder %v794_v50, 8.507059e+37  ;;  %v1091_v49 = vld [vmem:[#allocation2 + $0xe] sm:$0x3] }
 0xae7   :  { %v1372_v14 = vpop.eup %1371 }
 0xae8   :  { %v786_v15 = vmul.f32 %v1372_v14, %v784_v8  ;;  %vm791_vm3 = vweird.f32 %v1372_v14 }
 0xae9   :  { %vm792_vm6 = vmor %vm790_vm4, %vm791_vm3  ;;  %v840_v56 = vpop.f32.mrf.mxu2  ;;  %vm1259_vm4 = vcmask 58368  }
 0xaea   :  { %v787_v16 = vsub.f32 1.0, %v786_v15  ;;  %v841_v57 = vadd.f32 %v1691_v23, %v840_v56 }
 0xaec   :  { %v788_v47 = vmul.f32 %v1372_v14, %v787_v16  ;;  %v843_v58 = vmax.f32 %v841_v57, 0.0 }
 0xaee   :  { %v789_v48 = vadd.f32 %v1372_v14, %v788_v47  ;;  %1305 = vmatmul.msk.f32.vlgmr.msra.gmra.mxu3 %vm134_vm0, %v843_v58 }
 0xaef   :  { %1040 = vmatpush.msra.mxu3 %v1665_v17 }
 0xaf0   :  { %v793_v51 = vsel %vm792_vm6, %v1372_v14, %v789_v48 }
 0xaf1   :  { %v798_v53 = vsel %vm795_vm7, %v797_v52, %v793_v51  ;;  %1041 = vmatpush.msra.mxu3 %v1667_v18 }
 0xaf2   :  { %v801_v29 = vmul.f32 %v798_v53, %v1924_v36 }
 0xaf3   :  { %1042 = vmatpush.msra.mxu3 %v1675_v20 }
 0xaf5   :  { %1043 = vmatpush.msra.mxu3 %v1681_v21 }
 0xaf7   :  { %1044 = vmatpush.msra.mxu3 %v1684_v22 }
 0xaf9   :  { %1045 = vmatpush.msra.mxu3 %v1700_v28 }
 0xafb   :  { %1046 = vmatpush.msra.mxu3 %v1709_v30 }
 0xafd   :  { %1047 = vmatpush.msra.mxu3 %v1720_v32 }
 0xb4f   :  { %v804_v19 = vpop.permute.xlu1 %803 }
 0xb50   :  { %v806_v27 = vmul.f32 %v804_v19, %v798_v53 }
 0xb52   :  { %808 = vrot.lane.b32.xlu2 %v806_v27, %s1532_s25 }
 0xb71   :  { %v864_v61 = vpop.f32.mrf.mxu3 }
 0xb72   :  { %v865_v13 = vadd.f32 %v1759_v34, %v864_v61 }
 0xb74   :  { %v867_v25 = vmax.f32 %v865_v13, 0.0 }
 0xbac   :  { %v809_v31 = vpop.permute.xlu2 %808 }
 0xbad   :  { %v1960_v54 = vadd.f32 %v809_v31, %v801_v29 }
 0xbaf   :  { %1373 = vtanh.f32 %v1960_v54 }
 0xbb5   :  { %v1374_v55 = vpop.eup %1373 }
 0xbb6   :  { %814 = vrot.lane.b32.xlu0 %v1374_v55, %s1537_s26 }
 0xc28   :  { %v815_v59 = vpop.permute.xlu0 %814 }
 0xc29   :  { %v817_v60 = vmul.f32 %v815_v59, %v798_v53  ;;  %v1399_v59 = vld [vmem:[%s2045_s2] ss:$0 sm:$0xff] }
 0xc2b   :  { %869 = vrot.lane.b32.xlu1 %v817_v60, %s1532_s25 }
 0xc9d   :  { %v870_v62 = vpop.permute.xlu1 %869 }
 0xc9e   :  { %1306 = vmatmul.msk.f32.vlgmr.msrb.gmra.mxu0 %vm186_vm5, %v870_v62 }
 0xc9f   :  { %1103 = vmatpush.msrb.mxu0 %v1608_v0 }
 0xca1   :  { %1104 = vmatpush.msrb.mxu0 %v1610_v1 }
 0xca3   :  { %1105 = vmatpush.msrb.mxu0 %v1613_v2 }
 0xca5   :  { %1106 = vmatpush.msrb.mxu0 %v1620_v5 }
 0xca6   :  { %1307 = vmatmul.msk.f32.vlgmr.msra.gmra.mxu0 %vm134_vm0, %v867_v25 }
 0xca7   :  { %1107 = vmatpush.msrb.mxu0 %v1626_v7  ;;  %v955_v7 = vld [vmem:[#allocation2 + $0xc] sm:$0x3] }
 0xca8   :  { %1309 = vmatmul.msk.f32.vlgmr.msra.gmra.mxu1 %vm134_vm0, %v955_v7 }
 0xca9   :  { %1108 = vmatpush.msrb.mxu0 %v1632_v9 }
 0xcab   :  { %1109 = vmatpush.msrb.mxu0 %v1638_v11 }
 0xcad   :  { %1110 = vmatpush.msrb.mxu0 %v1642_v12 }
 0xcae   :  { %1314 = vmatmul.msk.f32.vlgmr.msrb.gmra.mxu0 %vm134_vm0, %v1091_v49 }
 0xd1b   :  { %v890_v26 = vpop.f32.mrf.mxu0 }
 0xd23   :  { %v913_v33 = vpop.f32.mrf.mxu0 }
 0xd24   :  { %v914_v0 = vadd.f32 %v913_v33, %v890_v26 }
 0xd25   :  { %v976_v45 = vpop.f32.mrf.mxu1 }
 0xd26   :  { %v916_v1 = vadd.f32 %v1778_v39, %v914_v0  ;;  %v977_v46 = vadd.f32 %v1691_v23, %v976_v45 }
 0xd28   :  { %1375 = vtanh.f32 %v916_v1  ;;  %v1308_v2 = vmul.f32 -1.442695, %v916_v1  ;;  %v979_v3 = vmax.f32 %v977_v46, 0.0 }
 0xd2a   :  { %1377 = vpow2.f32 %v1308_v2  ;;  %1310 = vmatmul.msk.f32.vlgmr.msra.gmra.mxu2 %vm134_vm0, %v979_v3 }
 0xd2b   :  { %1176 = vmatpush.msra.mxu2 %v1665_v17  ;;  %v1112_v58 = vpop.f32.mrf.mxu0 }
 0xd2c   :  { %v1113_v60 = vadd.f32 %v1399_v59, %v1112_v58 }
 0xd2d   :  { %1177 = vmatpush.msra.mxu2 %v1667_v18 }
 0xd2e   :  { %v1376_v35 = vpop.eup %1375  ;;  %v1115_v61 = vmax.f32 %v1113_v60, 0.0 }
 0xd2f   :  { %939 = vrot.lane.b32.xlu2 %v1376_v35, %s1537_s26  ;;  %1178 = vmatpush.msra.mxu2 %v1675_v20 }
 0xd30   :  { %v1378_v5 = vpop.eup %1377  ;;  %1315 = vmatmul.msk.f32.vlgmr.msrb.gmra.mxu1 %vm134_vm0, %v1115_v61 }
 0xd31   :  { %v920_v36 = vadd.f32 1.0, %v1378_v5  ;;  %1179 = vmatpush.msra.mxu2 %v1681_v21 }
 0xd33   :  { %1379 = vrcp.f32 %v920_v36  ;;  %v932_v40 = vand.u32 2147483648, %v920_v36  ;;  %vm926_vm9 = vweird.f32 %v920_v36  ;;  %v930_v24 = vand.u32 2147483647, %v920_v36  ;;  %1180 = vmatpush.msra.mxu2 %v1684_v22 }
 0xd35   :  { %v933_v41 = vor.u32 1.1754944e-38, %v932_v40  ;;  %vm931_vm11 = vcmp.eq.f32.partialorder %v930_v24, 8.507059e+37  ;;  %1181 = vmatpush.msra.mxu2 %v1700_v28 }
 0xd37   :  { %1182 = vmatpush.msra.mxu2 %v1709_v30 }
 0xd39   :  { %v1380_v9 = vpop.eup %1379  ;;  %1183 = vmatpush.msra.mxu2 %v1720_v32 }
 0xd3a   :  { %v922_v11 = vmul.f32 %v1380_v9, %v920_v36  ;;  %vm927_vm8 = vweird.f32 %v1380_v9 }
 0xd3b   :  { %vm928_vm10 = vmor %vm926_vm9, %vm927_vm8 }
 0xd3c   :  { %v923_v12 = vsub.f32 1.0, %v922_v11 }
 0xd3e   :  { %v924_v37 = vmul.f32 %v1380_v9, %v923_v12 }
 0xd40   :  { %v925_v38 = vadd.f32 %v1380_v9, %v924_v37 }
 0xd42   :  { %v929_v63 = vsel %vm928_vm10, %v1380_v9, %v925_v38 }
 0xd43   :  { %v934_v43 = vsel %vm931_vm11, %v933_v41, %v929_v63 }
 0xd44   :  { %v937_v4 = vmul.f32 %v934_v43, %v1960_v54 }
 0xd89   :  { %v940_v42 = vpop.permute.xlu2 %939 }
 0xd8a   :  { %v942_v44 = vmul.f32 %v940_v42, %v934_v43 }
 0xd8c   :  { %944 = vrot.lane.b32.xlu0 %v942_v44, %s1532_s25 }
 0xdad   :  { %v1000_v21 = vpop.f32.mrf.mxu2  ;;  %v1136_v1 = vpop.f32.mrf.mxu1 }
 0xdae   :  { %v1001_v28 = vadd.f32 %v1759_v34, %v1000_v21  ;;  %v1137_v2 = vadd.f32 %v1759_v34, %v1136_v1  ;;  %v1228_v21 = vld [vmem:[%s2051_s8 + $0x10] sm:$0xff] }
 0xdb0   :  { %v1003_v30 = vmax.f32 %v1001_v28, 0.0  ;;  %v1139_v5 = vmax.f32 %v1137_v2, 0.0  ;;  %v1226_v28 = vld [vmem:[%s2051_s8] sm:$0xff] }
 0xdfe   :  { %v945_v23 = vpop.permute.xlu0 %944 }
 0xdff   :  { %v947_v6 = vadd.f32 %v945_v23, %v937_v4 }
 0xe01   :  { %1381 = vtanh.f32 %v947_v6 }
 0xe07   :  { %v1382_v17 = vpop.eup %1381 }
 0xe08   :  { %950 = vrot.lane.b32.xlu1 %v1382_v17, %s1537_s26 }
 0xe7a   :  { %v951_v18 = vpop.permute.xlu1 %950 }
 0xe7b   :  { %v953_v20 = vmul.f32 %v951_v18, %v934_v43 }
 0xe7d   :  { %1005 = vrot.lane.b32.xlu2 %v953_v20, %s1532_s25  ;;  %v1229_v20 = vld [vmem:[%s2051_s8 + $0x18] sm:$0xff] }
 0xed7   :  { %v1006_v22 = vpop.permute.xlu2 %1005 }
 0xed8   :  { %1311 = vmatmul.msk.f32.vlgmr.msrb.gmra.mxu3 %vm186_vm5, %v1006_v22  ;;  %v1227_v22 = vld [vmem:[%s2051_s8 + $0x8] sm:$0xff] }
 0xed9   :  { %1251 = vmatpush.msrb.mxu3 %v1229_v20 }
 0xedb   :  { %1252 = vmatpush.msrb.mxu3 %v1228_v21 }
 0xedd   :  { %1253 = vmatpush.msrb.mxu3 %v1227_v22 }
 0xedf   :  { %1254 = vmatpush.msrb.mxu3 %v1226_v28 }
 0xee0   :  { %1312 = vmatmul.msk.f32.vlgmr.msra.gmra.mxu3 %vm134_vm0, %v1003_v30 }
 0xf5b   :  { %v1026_v8 = vpop.f32.mrf.mxu3 }
 0xf63   :  { %v1049_v32 = vpop.f32.mrf.mxu3 }
 0xf64   :  { %v1050_v10 = vadd.f32 %v1049_v32, %v1026_v8 }
 0xf66   :  { %v1052_v14 = vadd.f32 %v1778_v39, %v1050_v10  ;;  %v1334_v10 = vld [vmem:[%s2052_s9] ss:$0 sm:$0xff] }
 0xf68   :  { %1383 = vtanh.f32 %v1052_v14  ;;  %v1313_v16 = vmul.f32 -1.442695, %v1052_v14 }
 0xf6a   :  { %1385 = vpow2.f32 %v1313_v16 }
 0xf6e   :  { %v1384_v15 = vpop.eup %1383 }
 0xf6f   :  { %1075 = vrot.lane.b32.xlu0 %v1384_v15, %s1537_s26 }
 0xf70   :  { %v1386_v47 = vpop.eup %1385 }
 0xf71   :  { %v1056_v48 = vadd.f32 1.0, %v1386_v47 }
 0xf73   :  { %1387 = vrcp.f32 %v1056_v48  ;;  %v1068_v27 = vand.u32 2147483648, %v1056_v48  ;;  %vm1062_vm13 = vweird.f32 %v1056_v48  ;;  %v1066_v29 = vand.u32 2147483647, %v1056_v48 }
 0xf75   :  { %v1069_v54 = vor.u32 1.1754944e-38, %v1068_v27  ;;  %vm1067_vm15 = vcmp.eq.f32.partialorder %v1066_v29, 8.507059e+37 }
 0xf79   :  { %v1388_v50 = vpop.eup %1387 }
 0xf7a   :  { %v1058_v51 = vmul.f32 %v1388_v50, %v1056_v48  ;;  %vm1063_vm12 = vweird.f32 %v1388_v50 }
 0xf7b   :  { %vm1064_vm14 = vmor %vm1062_vm13, %vm1063_vm12 }
 0xf7c   :  { %v1059_v52 = vsub.f32 1.0, %v1058_v51 }
 0xf7e   :  { %v1060_v19 = vmul.f32 %v1388_v50, %v1059_v52 }
 0xf80   :  { %v1061_v53 = vadd.f32 %v1388_v50, %v1060_v19 }
 0xf82   :  { %v1065_v31 = vsel %vm1064_vm14, %v1388_v50, %v1061_v53 }
 0xf83   :  { %v1070_v56 = vsel %vm1067_vm15, %v1069_v54, %v1065_v31 }
 0xf84   :  { %v1073_v62 = vmul.f32 %v1070_v56, %v947_v6 }
 0xfe1   :  { %v1076_v55 = vpop.permute.xlu0 %1075 }
 0xfe2   :  { %v1078_v57 = vmul.f32 %v1076_v55, %v1070_v56 }
 0xfe4   :  { %1080 = vrot.lane.b32.xlu1 %v1078_v57, %s1532_s25 }
0x1056   :  { %v1081_v13 = vpop.permute.xlu1 %1080 }
0x1057   :  { %v1083_v25 = vadd.f32 %v1081_v13, %v1073_v62 }
0x1059   :  { %1389 = vtanh.f32 %v1083_v25 }
0x105f   :  { %v1390_v26 = vpop.eup %1389 }
0x1060   :  { %1086 = vrot.lane.b32.xlu2 %v1390_v26, %s1537_s26 }
0x10ba   :  { %v1087_v33 = vpop.permute.xlu2 %1086 }
0x10bb   :  { %v1089_v0 = vmul.f32 %v1087_v33, %v1070_v56 }
0x10bd   :  { %1141 = vrot.lane.b32.xlu0 %v1089_v0, %s1532_s25 }
0x112f   :  { %v1142_v35 = vpop.permute.xlu0 %1141 }
0x1130   :  { %1316 = vmatmul.msk.f32.vlgmr.msrb.gmra.mxu2 %vm186_vm5, %v1142_v35 }
0x1138   :  { %1317 = vmatmul.msk.f32.vlgmr.msra.gmra.mxu2 %vm134_vm0, %v1139_v5 }
0x11b3   :  { %v1162_v36 = vpop.f32.mrf.mxu2 }
0x11bb   :  { %v1185_v7 = vpop.f32.mrf.mxu2 }
0x11bc   :  { %v1186_v9 = vadd.f32 %v1185_v7, %v1162_v36 }
0x11be   :  { %v1188_v11 = vadd.f32 %v1778_v39, %v1186_v9 }
0x11c0   :  { %1391 = vtanh.f32 %v1188_v11  ;;  %v1318_v37 = vmul.f32 -1.442695, %v1188_v11 }
0x11c2   :  { %1393 = vpow2.f32 %v1318_v37 }
0x11c6   :  { %v1392_v12 = vpop.eup %1391 }
0x11c7   :  { %1211 = vrot.lane.b32.xlu1 %v1392_v12, %s1537_s26 }
0x11c8   :  { %v1394_v38 = vpop.eup %1393 }
0x11c9   :  { %v1192_v40 = vadd.f32 1.0, %v1394_v38 }
0x11cb   :  { %1395 = vrcp.f32 %v1192_v40  ;;  %v1204_v43 = vand.u32 2147483648, %v1192_v40  ;;  %vm1198_vm1 = vweird.f32 %v1192_v40  ;;  %v1202_v44 = vand.u32 2147483647, %v1192_v40 }
0x11cd   :  { %v1205_v45 = vor.u32 1.1754944e-38, %v1204_v43  ;;  %vm1203_vm3 = vcmp.eq.f32.partialorder %v1202_v44, 8.507059e+37 }
0x11d1   :  { %v1396_v24 = vpop.eup %1395 }
0x11d2   :  { %v1194_v63 = vmul.f32 %v1396_v24, %v1192_v40  ;;  %vm1199_vm0 = vweird.f32 %v1396_v24 }
0x11d3   :  { %vm1200_vm2 = vmor %vm1198_vm1, %vm1199_vm0 }
0x11d4   :  { %v1195_v34 = vsub.f32 1.0, %v1194_v63 }
0x11d6   :  { %v1196_v41 = vmul.f32 %v1396_v24, %v1195_v34 }
0x11d8   :  { %v1197_v42 = vadd.f32 %v1396_v24, %v1196_v41 }
0x11da   :  { %v1201_v39 = vsel %vm1200_vm2, %v1396_v24, %v1197_v42 }
0x11db   :  { %v1206_v3 = vsel %vm1203_vm3, %v1205_v45, %v1201_v39 }
0x11dc   :  { %v1209_v23 = vmul.f32 %v1206_v3, %v1083_v25 }
0x1239   :  { %v1212_v46 = vpop.permute.xlu1 %1211 }
0x123a   :  { %v1214_v4 = vmul.f32 %v1212_v46, %v1206_v3 }
0x123c   :  { %1216 = vrot.lane.b32.xlu2 %v1214_v4, %s1532_s25 }
0x1296   :  { %v1217_v6 = vpop.permute.xlu2 %1216 }
0x1297   :  { %v1219_v17 = vadd.f32 %v1217_v6, %v1209_v23 }
0x1299   :  { %1397 = vtanh.f32 %v1219_v17 }
0x129f   :  { %v1398_v18 = vpop.eup %1397 }
0x12a0   :  { %1222 = vrot.lane.b32.xlu0 %v1398_v18, %s1537_s26 }
0x1312   :  { %v1223_v30 = vpop.permute.xlu0 %1222 }
0x1313   :  { %v1225_v8 = vmul.f32 %v1223_v30, %v1206_v3 }
0x1315   :  { %1235 = vrot.lane.b32.xlu1 %v1225_v8, %s1532_s25 }
0x1387   :  { %v1236_v32 = vpop.permute.xlu1 %1235 }
0x1388   :  { %1319 = vmatmul.msk.f32.vlgmr.msrb.gmra.mxu3 %vm186_vm5, %v1236_v32 }
0x140b   :  { %v1256_v14 = vpop.f32.mrf.mxu3 }
0x140c   :  { %v1257_v15 = vadd.f32 %v1334_v10, %v1256_v14 }
0x140e   :  { %1260 = vst.msk [vmem:[#allocation10] sm:$0x3] %vm1259_vm4, %v1257_v15 }
0x140f   :  { %1271 = dma.vmem_to_hbm [thread:$0]  %s1267_s5, 32, %s1269_s17, [#allocation4]  }
0x1410   :  { %1526 = dma.done.wait [#allocation4], 32  }
0x1411   :  { %1527 = vsyncadd [#allocation4], 4294967264 }
0x1412   :  { %1276 = vsyncpa [#allocation3], 1 }
0x1413   :  { %1277 = vsyncpa [#allocation6], 1 }
0x1414   :  { %1278 = vsyncpa [#allocation9], 1 }
0x1415   :  { %1279 = vsyncpa [#allocation4], 1 }

</bundles_post_ra>
